<compile_context>
chip_gen: v7x
topology: tpu7x:2x2x1
jax: 0.10.0
libtpu: 0.0.40
codegen_flags: <defaults>
</compile_context>

<pallas_src>
import jax
import jax.numpy as jnp
from jax.experimental import pallas as pl
from jax.experimental.pallas import tpu as pltpu

_LANE = 128


def _round_up(n, m):
    return ((n + m - 1) // m) * m


def _mlp_kernel(x_ref, w1_ref, b1_ref, w2_ref, b2_ref, w3_ref, b3_ref, o_ref):
    """Fused 3-layer MLP (BN folded into W/b; Dropout = identity).

    x_ref  : (TB, D)   f32 input tile (cast to compute dtype in-kernel)
    w*_ref : (in, out) BN-folded linear weights (transposed vs. PyTorch)
    b*_ref : (1, out)  BN-folded linear bias (f32)
    o_ref  : (TB, 128) lane-dense logits tile (only first 2 cols are real)
    """
    # In-kernel cast (cheap VPU pack) instead of a separate host-side XLA pass.
    x = x_ref[...].astype(w1_ref.dtype)

    # Layer 1: Linear(D, 512) [BN folded] -> ReLU  (Dropout = identity, eval)
    h1 = jnp.dot(x, w1_ref[...], preferred_element_type=jnp.float32) + b1_ref[...]
    h1 = jnp.maximum(h1, 0.0).astype(w2_ref.dtype)

    # Layer 2: Linear(512, 64 -> padded 128) [BN folded] -> ReLU
    h2 = jnp.dot(h1, w2_ref[...], preferred_element_type=jnp.float32) + b2_ref[...]
    h2 = jnp.maximum(h2, 0.0).astype(w3_ref.dtype)

    # Layer 3: Linear(64 -> padded 128, 2 -> padded 128), lane-dense store.
    o_ref[...] = (jnp.dot(h2, w3_ref[...], preferred_element_type=jnp.float32)
                  + b3_ref[...]).astype(o_ref.dtype)


def prepare_params(params, compute_dtype):
    """Fold BN into the Linear layers and zero-pad to lane-dense shapes.

    Call once at model-build time (not per forward).  Returns
    (w1, b1, w2, b2, w3, b3, n_out) with weights in `compute_dtype`,
    biases in f32, hidden dim padded 64->128 and output dim padded 2->128.
    """
    (w1, b1, s1, t1, w2, b2, s2, t2, w3, b3) = params

    # Fold BN (y = (x@W + b) * s + t) -> W' = W*s (column scale), b' = b*s + t.
    w1f = w1 * s1
    b1f = b1 * s1 + t1
    w2f = w2 * s2
    b2f = b2 * s2 + t2

    # Pad hidden dim 64 -> 128 (zero columns of w2/b2, zero rows of w3).
    H2 = w2f.shape[1]
    H2p = _round_up(H2, _LANE)
    w2f = jnp.pad(w2f, ((0, 0), (0, H2p - H2)))
    b2f = jnp.pad(b2f, ((0, 0), (0, H2p - H2)))
    w3p = jnp.pad(w3, ((0, H2p - H2), (0, 0)))

    # Pad output dim 2 -> 128 for an unmasked, lane-dense store.
    n_out = w3p.shape[1]
    Op = _round_up(n_out, _LANE)
    w3p = jnp.pad(w3p, ((0, 0), (0, Op - n_out)))
    b3p = jnp.pad(b3, ((0, 0), (0, Op - n_out)))

    cd = compute_dtype
    return (w1f.astype(cd), b1f.astype(jnp.float32),
            w2f.astype(cd), b2f.astype(jnp.float32),
            w3p.astype(cd), b3p.astype(jnp.float32),
            n_out)


def _choose_batch_tile(B, batch_tile, mult):
    """Pick the batch tile: big, sublane-aligned, >=2 grid steps, divides B."""
    tb = _round_up(min(batch_tile, B), mult)
    # Keep at least 2 grid steps when the batch allows it (v7x dual-TC).
    if B >= 2 * mult:
        half = _round_up((B + 1) // 2, mult)
        tb = min(tb, half)
    # Prefer a tile that divides B so the x/out zero-pad copy is avoided,
    # but only if it doesn't shrink the tile below half of the chosen size.
    if B % tb != 0:
        d = tb
        while d > mult and B % d != 0:
            d -= mult
        if B % d == 0 and d >= max(mult, tb // 2):
            tb = d
    return tb


def combined_model_forward(x, folded_params, *, batch_tile=512):
    """Fused MLP forward.  x: (B, D) float32 -> logits (B, 2) float32.

    `folded_params` comes from prepare_params(); its weight dtype selects the
    compute path (bf16 fast path, float32 for bit-exact eval semantics).
    """
    w1, b1, w2, b2, w3, b3, n_out = folded_params
    B, D = x.shape
    H1, H2p, Op = w1.shape[1], w2.shape[1], w3.shape[1]
    cdt = w1.dtype
    out_dtype = cdt                      # bf16 output on the fast path
    itemsize = jnp.dtype(cdt).itemsize
    out_itemsize = jnp.dtype(out_dtype).itemsize

    # bf16 packs 16 rows per vreg sublane-wise; f32 packs 8.
    mult = 16 if itemsize < 4 else 8
    tb = _choose_batch_tile(B, batch_tile, mult)
    Bp = _round_up(B, tb)
    xp = x if Bp == B else jnp.pad(x, ((0, Bp - B), (0, 0)))
    grid = (Bp // tb,)

    # Cost / VMEM bookkeeping (Python ints; leaves headroom, capped at 64 MiB
    # which is within physical VMEM on v5e/v6e/v7x).
    param_bytes = (D * H1 + H1 * H2p + H2p * Op) * itemsize + (H1 + H2p + Op) * 4
    flops = 2 * Bp * (D * H1 + H1 * H2p + H2p * Op)
    bytes_accessed = Bp * D * 4 + param_bytes + Bp * Op * out_itemsize
    needed = (2 * (tb * D * 4 + tb * Op * out_itemsize)   # x/out, double-buffered
              + 2 * param_bytes                            # conservative
              + tb * (H1 + H2p) * 4)                       # intermediates
    vmem_limit = int(min(max(needed + (8 << 20), 32 << 20), 64 << 20))

    def run(weight_mode):
        def row_spec(n_cols):
            # full feature dim, tiled along the batch
            return pl.BlockSpec((tb, n_cols), lambda i: (i, 0))

        def param_spec(r, c):
            # whole (un-tiled) parameter, constant across the grid
            return pl.BlockSpec((r, c), lambda i: (0, 0),
                                pipeline_mode=weight_mode)

        return pl.pallas_call(
            _mlp_kernel,
            out_shape=jax.ShapeDtypeStruct((Bp, Op), out_dtype),
            grid_spec=pltpu.PrefetchScalarGridSpec(
                num_scalar_prefetch=0,
                grid=grid,
                in_specs=[
                    row_spec(D),            # x (f32 in HBM, cast in-kernel)
                    param_spec(D, H1),      # w1 (BN folded)
                    param_spec(1, H1),      # b1 (BN folded)
                    param_spec(H1, H2p),    # w2 (BN folded, padded)
                    param_spec(1, H2p),     # b2 (BN folded, padded)
                    param_spec(H2p, Op),    # w3 (padded)
                    param_spec(1, Op),      # b3 (padded)
                ],
                out_specs=row_spec(Op),
            ),
            compiler_params=pltpu.CompilerParams(
                dimension_semantics=("parallel",),
                vmem_limit_bytes=vmem_limit),
            cost_estimate=pl.CostEstimate(flops=flops, transcendentals=0,
                                          bytes_accessed=bytes_accessed),
        )(xp, w1, b1, w2, b2, w3, b3)

    # Constant index_map -> a single buffer per weight is enough (halves
    # resident weight VMEM).  Fall back to default pipelining if the current
    # Pallas/Mosaic build rejects Buffered(1).
    try:
        out = run(pl.Buffered(1))
    except Exception:  # conservative fallback; never trade perf for a crash
        out = run(None)

    return out[:B, :n_out].astype(jnp.float32)


def init_params(key, input_dim):
    """Deterministic synthetic parameters matching CombinedModel(input_dim)."""
    H1, H2, O = 512, 64, 2
    eps = 1e-5
    ks = jax.random.split(key, 16)

    def linear(kw, kb, fan_in, fan_out):
        bound = 1.0 / jnp.sqrt(fan_in)
        w = jax.random.uniform(kw, (fan_in, fan_out), jnp.float32, -bound, bound)
        b = jax.random.uniform(kb, (1, fan_out), jnp.float32, -bound, bound)
        return w, b

    def bn(kg, kb, km, kv, n):
        gamma = 1.0 + 0.1 * jax.random.normal(kg, (1, n), jnp.float32)
        beta = 0.1 * jax.random.normal(kb, (1, n), jnp.float32)
        running_mean = 0.1 * jax.random.normal(km, (1, n), jnp.float32)
        running_var = 1.0 + 0.1 * jax.random.uniform(kv, (1, n), jnp.float32)
        scale = gamma / jnp.sqrt(running_var + eps)
        shift = beta - running_mean * scale
        return scale, shift

    w1, b1 = linear(ks[0], ks[1], input_dim, H1)
    s1, t1 = bn(ks[2], ks[3], ks[4], ks[5], H1)
    w2, b2 = linear(ks[6], ks[7], H1, H2)
    s2, t2 = bn(ks[8], ks[9], ks[10], ks[11], H2)
    w3, b3 = linear(ks[12], ks[13], H2, O)
    return (w1, b1, s1, t1, w2, b2, s2, t2, w3, b3)


def reference_forward(x, params):
    """Pure-JAX f32 reference of the same (eval-mode) forward pass."""
    (w1, b1, s1, t1, w2, b2, s2, t2, w3, b3) = params
    h = jnp.maximum((x @ w1 + b1) * s1 + t1, 0.0)
    h = jnp.maximum((h @ w2 + b2) * s2 + t2, 0.0)
    return h @ w3 + b3


if __name__ == "__main__":
    key = jax.random.PRNGKey(0)
    k_x, k_p = jax.random.split(key)

    batch, input_dim = 256, 32
    x = jax.random.normal(k_x, (batch, input_dim), jnp.float32)
    params = init_params(k_p, input_dim)
    ref = reference_forward(x, params)

    # Exact path (f32 operands/output): verifies BN folding + padding + tiling.
    folded_f32 = prepare_params(params, jnp.float32)
    logits_f32 = jax.block_until_ready(combined_model_forward(x, folded_f32))
    assert logits_f32.shape == (batch, 2)
    assert jnp.allclose(logits_f32, ref, atol=1e-4, rtol=1e-4), \
        "f32 kernel mismatch vs reference"

    # Fast path (bf16 operands + bf16 output, f32 MXU accumulation).
    folded_bf16 = prepare_params(params, jnp.bfloat16)
    logits_bf16 = jax.block_until_ready(combined_model_forward(x, folded_bf16))
    assert logits_bf16.shape == (batch, 2)
    assert jnp.allclose(logits_bf16, ref, atol=5e-2, rtol=5e-2), \
        "bf16 kernel mismatch vs reference"

    print("KERNEL_OK")
</pallas_src>

<mosaic_0001>
module attributes {stable_mosaic.version = 11 : i64} {
  func.func @_mlp_kernel(%arg0: i32, %arg1: memref<128x32xf32, #tpu.memory_space<vmem>>, %arg2: memref<32x512xf32, #tpu.memory_space<vmem>>, %arg3: memref<1x512xf32, #tpu.memory_space<vmem>>, %arg4: memref<512x128xf32, #tpu.memory_space<vmem>>, %arg5: memref<1x128xf32, #tpu.memory_space<vmem>>, %arg6: memref<128x128xf32, #tpu.memory_space<vmem>>, %arg7: memref<1x128xf32, #tpu.memory_space<vmem>>, %arg8: memref<128x128xf32, #tpu.memory_space<vmem>>) attributes {dimension_semantics = [#tpu.dimension_semantics<parallel>], iteration_bounds = array<i64: 2>, scalar_prefetch = 0 : i64, scratch_operands = 0 : i64, tpu.core_type = #tpu.core_type<tc>, window_params = [{transform_indices = @transform_0, window_bounds = array<i64: 128, 32>}, {pipeline_mode = #tpu.pipeline_mode<synchronous>, transform_indices = @transform_1, window_bounds = array<i64: 32, 512>}, {pipeline_mode = #tpu.pipeline_mode<synchronous>, transform_indices = @transform_2, window_bounds = array<i64: 1, 512>}, {pipeline_mode = #tpu.pipeline_mode<synchronous>, transform_indices = @transform_3, window_bounds = array<i64: 512, 128>}, {pipeline_mode = #tpu.pipeline_mode<synchronous>, transform_indices = @transform_4, window_bounds = array<i64: 1, 128>}, {pipeline_mode = #tpu.pipeline_mode<synchronous>, transform_indices = @transform_5, window_bounds = array<i64: 128, 128>}, {pipeline_mode = #tpu.pipeline_mode<synchronous>, transform_indices = @transform_6, window_bounds = array<i64: 1, 128>}, {transform_indices = @transform_7, window_bounds = array<i64: 128, 128>}]} {
    %c0 = arith.constant 0 : index
    %c0_0 = arith.constant 0 : index
    %0 = vector.load %arg1[%c0, %c0_0] : memref<128x32xf32, #tpu.memory_space<vmem>>, vector<128x32xf32>
    %c0_1 = arith.constant 0 : index
    %c0_2 = arith.constant 0 : index
    %1 = vector.load %arg2[%c0_1, %c0_2] : memref<32x512xf32, #tpu.memory_space<vmem>>, vector<32x512xf32>
    %cst = arith.constant dense<0.000000e+00> : vector<128x512xf32>
    %2 = tpu.matmul %0, %1, %cst {dimension_numbers = #tpu.dot_dimension_numbers<[1], [0], [0], [1], [0, 0, 1, 1], [], []>} : vector<128x32xf32>, vector<32x512xf32>, vector<128x512xf32> -> vector<128x512xf32>
    %c0_3 = arith.constant 0 : index
    %c0_4 = arith.constant 0 : index
    %3 = vector.load %arg3[%c0_3, %c0_4] : memref<1x512xf32, #tpu.memory_space<vmem>>, vector<1x512xf32>
    %4 = vector.broadcast %3 : vector<1x512xf32> to vector<128x512xf32>
    %5 = arith.addf %2, %4 : vector<128x512xf32>
    %cst_5 = arith.constant 0.000000e+00 : f32
    %6 = vector.broadcast %cst_5 : f32 to vector<128x512xf32>
    %7 = arith.maximumf %5, %6 : vector<128x512xf32>
    %c0_6 = arith.constant 0 : index
    %c0_7 = arith.constant 0 : index
    %8 = vector.load %arg4[%c0_6, %c0_7] : memref<512x128xf32, #tpu.memory_space<vmem>>, vector<512x128xf32>
    %cst_8 = arith.constant dense<0.000000e+00> : vector<128x128xf32>
    %9 = tpu.matmul %7, %8, %cst_8 {dimension_numbers = #tpu.dot_dimension_numbers<[1], [0], [0], [1], [0, 0, 1, 1], [], []>} : vector<128x512xf32>, vector<512x128xf32>, vector<128x128xf32> -> vector<128x128xf32>
    %c0_9 = arith.constant 0 : index
    %c0_10 = arith.constant 0 : index
    %10 = vector.load %arg5[%c0_9, %c0_10] : memref<1x128xf32, #tpu.memory_space<vmem>>, vector<1x128xf32>
    %11 = vector.broadcast %10 : vector<1x128xf32> to vector<128x128xf32>
    %12 = arith.addf %9, %11 : vector<128x128xf32>
    %cst_11 = arith.constant 0.000000e+00 : f32
    %13 = vector.broadcast %cst_11 : f32 to vector<128x128xf32>
    %14 = arith.maximumf %12, %13 : vector<128x128xf32>
    %c0_12 = arith.constant 0 : index
    %c0_13 = arith.constant 0 : index
    %15 = vector.load %arg6[%c0_12, %c0_13] : memref<128x128xf32, #tpu.memory_space<vmem>>, vector<128x128xf32>
    %cst_14 = arith.constant dense<0.000000e+00> : vector<128x128xf32>
    %16 = tpu.matmul %14, %15, %cst_14 {dimension_numbers = #tpu.dot_dimension_numbers<[1], [0], [0], [1], [0, 0, 1, 1], [], []>} : vector<128x128xf32>, vector<128x128xf32>, vector<128x128xf32> -> vector<128x128xf32>
    %c0_15 = arith.constant 0 : index
    %c0_16 = arith.constant 0 : index
    %17 = vector.load %arg7[%c0_15, %c0_16] : memref<1x128xf32, #tpu.memory_space<vmem>>, vector<1x128xf32>
    %18 = vector.broadcast %17 : vector<1x128xf32> to vector<128x128xf32>
    %19 = arith.addf %16, %18 : vector<128x128xf32>
    %c0_17 = arith.constant 0 : index
    %c0_18 = arith.constant 0 : index
    %20 = vector.load %arg8[%c0_17, %c0_18] : memref<128x128xf32, #tpu.memory_space<vmem>>, vector<128x128xf32>
    tpu.vector_store %arg8[%c0_17, %c0_18], %19 {strides = array<i32>} : memref<128x128xf32, #tpu.memory_space<vmem>>, vector<128x128xf32>,
    return
  }
  func.func @transform_0(%arg0: i32) -> (i32, i32) {
    %c0_i32 = arith.constant 0 : i32
    %c0_i32_0 = arith.constant 0 : i32
    return %arg0, %c0_i32 : i32, i32
  }
  func.func @transform_1(%arg0: i32) -> (i32, i32) {
    %c0_i32 = arith.constant 0 : i32
    %c0_i32_0 = arith.constant 0 : i32
    %c0_i32_1 = arith.constant 0 : i32
    return %c0_i32, %c0_i32_0 : i32, i32
  }
  func.func @transform_2(%arg0: i32) -> (i32, i32) {
    %c0_i32 = arith.constant 0 : i32
    %c0_i32_0 = arith.constant 0 : i32
    %c0_i32_1 = arith.constant 0 : i32
    return %c0_i32, %c0_i32_0 : i32, i32
  }
  func.func @transform_3(%arg0: i32) -> (i32, i32) {
    %c0_i32 = arith.constant 0 : i32
    %c0_i32_0 = arith.constant 0 : i32
    %c0_i32_1 = arith.constant 0 : i32
    return %c0_i32, %c0_i32_0 : i32, i32
  }
  func.func @transform_4(%arg0: i32) -> (i32, i32) {
    %c0_i32 = arith.constant 0 : i32
    %c0_i32_0 = arith.constant 0 : i32
    %c0_i32_1 = arith.constant 0 : i32
    return %c0_i32, %c0_i32_0 : i32, i32
  }
  func.func @transform_5(%arg0: i32) -> (i32, i32) {
    %c0_i32 = arith.constant 0 : i32
    %c0_i32_0 = arith.constant 0 : i32
    %c0_i32_1 = arith.constant 0 : i32
    return %c0_i32, %c0_i32_0 : i32, i32
  }
  func.func @transform_6(%arg0: i32) -> (i32, i32) {
    %c0_i32 = arith.constant 0 : i32
    %c0_i32_0 = arith.constant 0 : i32
    %c0_i32_1 = arith.constant 0 : i32
    return %c0_i32, %c0_i32_0 : i32, i32
  }
  func.func @transform_7(%arg0: i32) -> (i32, i32) {
    %c0_i32 = arith.constant 0 : i32
    %c0_i32_0 = arith.constant 0 : i32
    return %arg0, %c0_i32 : i32, i32
  }
}

module attributes {stable_mosaic.version = 11 : i64} {
  func.func @_mlp_kernel(%arg0: i32, %arg1: memref<128x32xf32, #tpu.memory_space<vmem>>, %arg2: memref<32x512xf32, #tpu.memory_space<vmem>>, %arg3: memref<1x512xf32, #tpu.memory_space<vmem>>, %arg4: memref<512x128xf32, #tpu.memory_space<vmem>>, %arg5: memref<1x128xf32, #tpu.memory_space<vmem>>, %arg6: memref<128x128xf32, #tpu.memory_space<vmem>>, %arg7: memref<1x128xf32, #tpu.memory_space<vmem>>, %arg8: memref<128x128xf32, #tpu.memory_space<vmem>>) attributes {dimension_semantics = [#tpu.dimension_semantics<parallel>], iteration_bounds = array<i64: 2>, scalar_prefetch = 0 : i64, scratch_operands = 0 : i64, tpu.core_type = #tpu.core_type<tc>, window_params = [{transform_indices = @transform_0, window_bounds = array<i64: 128, 32>}, {pipeline_mode = #tpu.pipeline_mode<synchronous>, transform_indices = @transform_1, window_bounds = array<i64: 32, 512>}, {pipeline_mode = #tpu.pipeline_mode<synchronous>, transform_indices = @transform_2, window_bounds = array<i64: 1, 512>}, {pipeline_mode = #tpu.pipeline_mode<synchronous>, transform_indices = @transform_3, window_bounds = array<i64: 512, 128>}, {pipeline_mode = #tpu.pipeline_mode<synchronous>, transform_indices = @transform_4, window_bounds = array<i64: 1, 128>}, {pipeline_mode = #tpu.pipeline_mode<synchronous>, transform_indices = @transform_5, window_bounds = array<i64: 128, 128>}, {pipeline_mode = #tpu.pipeline_mode<synchronous>, transform_indices = @transform_6, window_bounds = array<i64: 1, 128>}, {transform_indices = @transform_7, window_bounds = array<i64: 128, 128>}]} {
    %c0 = arith.constant 0 : index
    %c0_0 = arith.constant 0 : index
    %0 = vector.load %arg1[%c0, %c0_0] : memref<128x32xf32, #tpu.memory_space<vmem>>, vector<128x32xf32>
    %c0_1 = arith.constant 0 : index
    %c0_2 = arith.constant 0 : index
    %1 = vector.load %arg2[%c0_1, %c0_2] : memref<32x512xf32, #tpu.memory_space<vmem>>, vector<32x512xf32>
    %cst = arith.constant dense<0.000000e+00> : vector<128x512xf32>
    %2 = tpu.matmul %0, %1, %cst {dimension_numbers = #tpu.dot_dimension_numbers<[1], [0], [0], [1], [0, 0, 1, 1], [], []>} : vector<128x32xf32>, vector<32x512xf32>, vector<128x512xf32> -> vector<128x512xf32>
    %c0_3 = arith.constant 0 : index
    %c0_4 = arith.constant 0 : index
    %3 = vector.load %arg3[%c0_3, %c0_4] : memref<1x512xf32, #tpu.memory_space<vmem>>, vector<1x512xf32>
    %4 = vector.broadcast %3 : vector<1x512xf32> to vector<128x512xf32>
    %5 = arith.addf %2, %4 : vector<128x512xf32>
    %cst_5 = arith.constant 0.000000e+00 : f32
    %6 = vector.broadcast %cst_5 : f32 to vector<128x512xf32>
    %7 = arith.maximumf %5, %6 : vector<128x512xf32>
    %c0_6 = arith.constant 0 : index
    %c0_7 = arith.constant 0 : index
    %8 = vector.load %arg4[%c0_6, %c0_7] : memref<512x128xf32, #tpu.memory_space<vmem>>, vector<512x128xf32>
    %cst_8 = arith.constant dense<0.000000e+00> : vector<128x128xf32>
    %9 = tpu.matmul %7, %8, %cst_8 {dimension_numbers = #tpu.dot_dimension_numbers<[1], [0], [0], [1], [0, 0, 1, 1], [], []>} : vector<128x512xf32>, vector<512x128xf32>, vector<128x128xf32> -> vector<128x128xf32>
    %c0_9 = arith.constant 0 : index
    %c0_10 = arith.constant 0 : index
    %10 = vector.load %arg5[%c0_9, %c0_10] : memref<1x128xf32, #tpu.memory_space<vmem>>, vector<1x128xf32>
    %11 = vector.broadcast %10 : vector<1x128xf32> to vector<128x128xf32>
    %12 = arith.addf %9, %11 : vector<128x128xf32>
    %cst_11 = arith.constant 0.000000e+00 : f32
    %13 = vector.broadcast %cst_11 : f32 to vector<128x128xf32>
    %14 = arith.maximumf %12, %13 : vector<128x128xf32>
    %c0_12 = arith.constant 0 : index
    %c0_13 = arith.constant 0 : index
    %15 = vector.load %arg6[%c0_12, %c0_13] : memref<128x128xf32, #tpu.memory_space<vmem>>, vector<128x128xf32>
    %cst_14 = arith.constant dense<0.000000e+00> : vector<128x128xf32>
    %16 = tpu.matmul %14, %15, %cst_14 {dimension_numbers = #tpu.dot_dimension_numbers<[1], [0], [0], [1], [0, 0, 1, 1], [], []>} : vector<128x128xf32>, vector<128x128xf32>, vector<128x128xf32> -> vector<128x128xf32>
    %c0_15 = arith.constant 0 : index
    %c0_16 = arith.constant 0 : index
    %17 = vector.load %arg7[%c0_15, %c0_16] : memref<1x128xf32, #tpu.memory_space<vmem>>, vector<1x128xf32>
    %18 = vector.broadcast %17 : vector<1x128xf32> to vector<128x128xf32>
    %19 = arith.addf %16, %18 : vector<128x128xf32>
    %c0_17 = arith.constant 0 : index
    %c0_18 = arith.constant 0 : index
    %20 = vector.load %arg8[%c0_17, %c0_18] : memref<128x128xf32, #tpu.memory_space<vmem>>, vector<128x128xf32>
    tpu.vector_store %arg8[%c0_17, %c0_18], %19 {strides = array<i32>} : memref<128x128xf32, #tpu.memory_space<vmem>>, vector<128x128xf32>,
    return
  }
  func.func @transform_0(%arg0: i32) -> (i32, i32) {
    %c0_i32 = arith.constant 0 : i32
    %c0_i32_0 = arith.constant 0 : i32
    return %arg0, %c0_i32 : i32, i32
  }
  func.func @transform_1(%arg0: i32) -> (i32, i32) {
    %c0_i32 = arith.constant 0 : i32
    %c0_i32_0 = arith.constant 0 : i32
    %c0_i32_1 = arith.constant 0 : i32
    return %c0_i32, %c0_i32_0 : i32, i32
  }
  func.func @transform_2(%arg0: i32) -> (i32, i32) {
    %c0_i32 = arith.constant 0 : i32
    %c0_i32_0 = arith.constant 0 : i32
    %c0_i32_1 = arith.constant 0 : i32
    return %c0_i32, %c0_i32_0 : i32, i32
  }
  func.func @transform_3(%arg0: i32) -> (i32, i32) {
    %c0_i32 = arith.constant 0 : i32
    %c0_i32_0 = arith.constant 0 : i32
    %c0_i32_1 = arith.constant 0 : i32
    return %c0_i32, %c0_i32_0 : i32, i32
  }
  func.func @transform_4(%arg0: i32) -> (i32, i32) {
    %c0_i32 = arith.constant 0 : i32
    %c0_i32_0 = arith.constant 0 : i32
    %c0_i32_1 = arith.constant 0 : i32
    return %c0_i32, %c0_i32_0 : i32, i32
  }
  func.func @transform_5(%arg0: i32) -> (i32, i32) {
    %c0_i32 = arith.constant 0 : i32
    %c0_i32_0 = arith.constant 0 : i32
    %c0_i32_1 = arith.constant 0 : i32
    return %c0_i32, %c0_i32_0 : i32, i32
  }
  func.func @transform_6(%arg0: i32) -> (i32, i32) {
    %c0_i32 = arith.constant 0 : i32
    %c0_i32_0 = arith.constant 0 : i32
    %c0_i32_1 = arith.constant 0 : i32
    return %c0_i32, %c0_i32_0 : i32, i32
  }
  func.func @transform_7(%arg0: i32) -> (i32, i32) {
    %c0_i32 = arith.constant 0 : i32
    %c0_i32_0 = arith.constant 0 : i32
    return %arg0, %c0_i32 : i32, i32
  }
}

</mosaic_0001>

<bundles_post_ra>
// kernel: tpu_custom_call.1
= control target key start
LH: loop header
LB: loop body
LE: loop exit
PB: predicated region body
PF: predicated region fallthrough
CT: control target
= control target key end

     0   :  { %12 = vsyncpa [#allocation3], 0  ;;  %s2545_s0 = inlined_call_operand.vmem [shape: f32[256,32], index: 0, kind: input, shape index: {}]   ;;  %s2546_s1 = inlined_call_operand.vmem [shape: f32[32,512], index: 1, kind: input, shape index: {}]   ;;  %s2547_s2 = inlined_call_operand.vmem [shape: f32[1,512], index: 2, kind: input, shape index: {}]   ;;  %s2548_s3 = inlined_call_operand.hbm [shape: f32[512,128], index: 3, kind: input, shape index: {}]   ;;  %s2549_s4 = inlined_call_operand.vmem [shape: f32[1,128], index: 4, kind: input, shape index: {}]   ;;  %s2550_s5 = inlined_call_operand.vmem [shape: f32[128,128], index: 5, kind: input, shape index: {}]   ;;  %s2551_s6 = inlined_call_operand.vmem [shape: f32[1,128], index: 6, kind: input, shape index: {}]   ;;  %s2552_s7 = inlined_call_operand.hbm [shape: f32[256,128], index: 7, kind: output, shape index: {}]  }
   0x1   :  { %13 = vsyncpa [#allocation4], 0 }
   0x2   :  { %15 = vsyncpa [#allocation4 + $0x1], 0  ;;  %s2044_s24 = smov 0   ;;  %s2046_s25 = smov 0  }
   0x3   :  { %s2048_s26 = smov 0   ;;  %s2050_s27 = smov 0  }
   0x4 LB: > { %s2065_s28 = sadd.s32 4294967295, %s1995_s27   ;;  %s1433_s29 = sadd.s32 4294967294, %s1995_s27   ;;  %s1995_s27 = sphi %s2050_s27, %s2568_s27   ;;  %s1991_s26 = sphi %s2048_s26, %s2567_s26   ;;  %s1987_s25 = sphi %s2046_s25, %s2566_s25   ;;  %s1983_s24 = sphi %s2044_s24, %s2565_s24  }
   0x5   : > { %s2069_s30 = sadd.s32 1, %s1995_s27   ;;  %s180_s8 = sadd.s32 1, %s1991_s26 }
   0x6   : > { %s177_s9 = ssub.s32 %s1995_s27, %s2069_s30  ;;  %p190_p0 = scmp.ne.s32.totalorder %s1991_s26, %s1987_s25 }
   0x7   : > { %p178_p1 = scmp.eq.s32.totalorder %s177_s9, 0  ;;  %p191_p2 = scmp.eq.s32.totalorder %s2065_s28, 1 }
   0x8   : > { %p196_p3 = scmp.ne.s32.totalorder %s1987_s25, %s1983_s24  ;;  %p197_p4 = scmp.eq.s32.totalorder %s1433_s29, 1 }
   0x9   : > { %s2080_s10 = scalar_select %p178_p1, %s1991_s26, %s180_s8  }
   0xa   : > { %p2082_p5 = por %p191_p2, %p190_p0  ;;  %p2086_p6 = por %p197_p4, %p196_p3 }
   0xb   : > { %p1434_p7 = scmp.ge.s32.totalorder %s1995_s27, 1  ;;  %p204_p8 = scmp.lt.s32.totalorder %s1995_s27, 3 }
   0xc   : > { %s2556_s11 = scalar_select %p2082_p5, 1, 0 }
   0xd   : > { %s2557_s12 = scalar_select %p2086_p6, 1, 0 }
   0xe   : > { %p2553_p9 = scmp.eq.s32.totalorder %s2065_s28, 0  ;;  %p2093_p10 = pnand %p1434_p7, %p204_p8 }
   0xf   : > { %s1997_s14 = smov [#allocation2]   ;;  %s1901_s19 = scalar_lea.hbm %s2548_s3, 8192 }
  0x10   : > { %s2558_s13 = scalar_select %p2093_p10, 1, 0 }
  0x11   : > { %s222_s15 = sshll.u32 %s1997_s14, 4  ;;  %p1852_p11 = pneg %p2093_p10  ;;  %s223_s15 = int_to_ptr.vmem [resolvable:$true] %s222_s15 }
  0x12   : > { %p1902_p13 = scmp.ne.s32.totalorder %s2548_s3, %s1901_s19  ;;  %p1908_p3 = scmp.lt.u32.totalorder %s1901_s19, %s2548_s3 }
  0x13   : > { %p2101_p12 = pnand %p2553_p9, %p1852_p11 }
  0x15   : > { %p1903_p0 = pneg %p2101_p12 }
  0x17   : > { %p1904_p1 = pnand %p1903_p0, %p1902_p13 }
  0x19   : > { %p1905_p2 = pneg %p1904_p1 }
  0x1b   : > { %p1910_p4 = pnand %p1908_p3, %p1905_p2 }
  0x1d   : > { %1913 = shalt.err (!%p1910_p4)
}
  0x1e   : > { %s1914_s29 = scalar_lea.vmem %s223_s15, 8192  ;;  %p1922_p9 = scmp.lt.s32.totalorder %s223_s15, %s223_s15 }
  0x1f   : > { %p1915_p7 = scmp.ne.s32.totalorder %s223_s15, %s1914_s29  ;;  %p1923_p6 = scmp.lt.s32.totalorder %s1914_s29, %s1914_s29 }
  0x21   : > { %p1917_p8 = pnand %p1915_p7, %p1903_p0  ;;  %p1924_p5 = por %p1923_p6, %p1922_p9 }
  0x23   : > { %p1918_p11 = pneg %p1917_p8 }
  0x25   : > { %p1925_p10 = pnand %p1924_p5, %p1918_p11 }
  0x27   : > { %1928 = shalt.err (!%p1925_p10)
}
  0x28   : > { %s1998_s8 = smov 128   ;;  %s1999_s9 = smov 8  }
  0x29   : > { %1855 = dma.hbm_to_vmem [thread:$0]  (!%p2101_p12), %s2548_s3, 8192, %s223_s15, [#allocation3], %s1998_s8, %s1998_s8, %s1999_s9  }
  0x2a   : > { %p2560_p13 = scmp.ne.s32.totalorder %s2558_s13, 0 }
  0x2b   : > { %p2561_p1 = scmp.eq.s32.totalorder (!%p2560_p13), %s2065_s28, 0 }
  0x2c   : > { %256 = sbr.rel (%p2560_p13) target bundleno = 807 (0x327), region = 48 }
  0x33   : > { %1974 = dma.done.wait (%p2561_p1), [#allocation3], 8192   ;;  %p2562_p0 = pmov %p2561_p1 }
  0x34   : > { %s1440_s18 = sshll.u32 %s2065_s28, 4  ;;  %v2000_v0 = vmov 0.0   ;;  %v312_v1 = vld [vmem:[%s2546_s1 + $0x8] sm:$0xff]  ;;  %v311_v3 = vld [vmem:[%s2546_s1] sm:$0xff]  ;;  %v314_v12 = vld [vmem:[%s2546_s1 + $0x18] sm:$0xff]  ;;  %vm349_vm0 = vcmask 261120  }
  0x35   : > { %1976 = vsyncadd (%p2562_p0), [#allocation3], 4294959104  ;;  %462 = vmatprep.mubr.f32.mxu0 %v2000_v0  ;;  %534 = vmatprep.mubr.f32.mxu1 %v2000_v0  ;;  %p289_p5 = scmp.lt.s32.totalorder %s1440_s18, 31  ;;  %v316_v2 = vld [vmem:[%s2546_s1 + $0x28] sm:$0xff]  ;;  %v315_v5 = vld [vmem:[%s2546_s1 + $0x20] sm:$0xff]  ;;  %s285_s20 = sand.u32 1, %s1987_s25  }
  0x36   : > { %v1730_v4 = vpack.c.bf16 %v316_v2, %v312_v1  ;;  %v320_v6 = vld [vmem:[%s2546_s1 + $0x48] sm:$0xff]  ;;  %v1732_v8 = vpack.c.bf16 %v315_v5, %v311_v3  ;;  %v319_v10 = vld [vmem:[%s2546_s1 + $0x40] sm:$0xff]  ;;  %v318_v13 = vld [vmem:[%s2546_s1 + $0x38] sm:$0xff]  ;;  %s1439_s21 = sshll.u32 %s285_s20, 7  ;;  %s1481_s29 = sshll.u32 %s2065_s28, 11 }
  0x37   : > { %s2570_s18 = smov (!%p289_p5, %s1440_s18), 31  ;;  %v324_v7 = vld [vmem:[%s2546_s1 + $0x68] sm:$0xff]  ;;  %v323_v11 = vld [vmem:[%s2546_s1 + $0x60] sm:$0xff]  ;;  %v1738_v15 = vpack.c.bf16 %v318_v13, %v314_v12  ;;  %v313_v16 = vld [vmem:[%s2546_s1 + $0x10] sm:$0xff]  ;;  %s2475_s23 = scalar_lea.vmem [#allocation5], %s1439_s21 }
  0x38   : > { %v1734_v9 = vpack.c.bf16 %v324_v7, %v320_v6  ;;  %s1441_s19 = sshll.u32 %s2570_s18, 3  ;;  %1731 = vmatprep.subr.bf16.mxu0 %v1730_v4  ;;  %1842 = vmatprep.subr.bf16.mxu1 %v1730_v4  ;;  %v1736_v14 = vpack.c.bf16 %v323_v11, %v319_v10  ;;  %v317_v17 = vld [vmem:[%s2546_s1 + $0x30] sm:$0xff]  ;;  %v322_v18 = vld [vmem:[%s2546_s1 + $0x58] sm:$0xff]  ;;  %v832_v26 = vld [vmem:[#allocation2 + $0x180] sm:$0xff]  ;;  %s1359_s8 = sshll.u32 %s2475_s23, 4  ;;  %s2498_s8 = int_to_ptr.vmem [resolvable:$true] %s1359_s8 }
  0x39   : > { %1733 = vmatpush1.bf16.msra.mxu0 %v1732_v8  ;;  %1844 = vmatpush1.bf16.msra.mxu1 %v1732_v8  ;;  %s2163_s9 = scalar_lea.vmem %s2545_s0, %s1441_s19  ;;  %v326_v19 = vld [vmem:[%s2546_s1 + $0x78] sm:$0xff]  ;;  %v1740_v22 = vpack.c.bf16 %v317_v17, %v313_v16  ;;  %v321_v24 = vld [vmem:[%s2546_s1 + $0x50] sm:$0xff]  ;;  %v833_v27 = vld [vmem:[#allocation2 + $0x188] sm:$0xff]  ;;  %s2496_s14 = scalar_lea.hbm %s2552_s7, %s1481_s29 }
  0x3a   : > { %1735 = vmatprep.subr.bf16.mxu0 %v1734_v9  ;;  %1843 = vmatprep.subr.bf16.mxu1 %v1734_v9  ;;  %v2178_v20 = vld [vmem:[%s2163_s9] sm:$0xff]  ;;  %v1742_v23 = vpack.c.bf16 %v326_v19, %v322_v18  ;;  %v325_v25 = vld [vmem:[%s2546_s1 + $0x70] sm:$0xff]  ;;  %v2195_v28 = vld [vmem:[%s2163_s9 + $0x8] sm:$0xff]  ;;  %v1778_v33 = vpack.c.bf16 %v833_v27, %v832_v26  ;;  %s2504_s17 = scalar_lea.sflag [#allocation4], %s285_s20  ;;  %s1929_s28 = scalar_lea.vmem %s2498_s8, 2048 }
  0x3b   : > { %v2181_v21 = vld [vmem:[%s2163_s9 + $0x60] sm:$0xff]  ;;  %v2198_v29 = vld [vmem:[%s2163_s9 + $0x68] sm:$0xff]  ;;  %v1744_v30 = vpack.c.bf16 %v325_v25, %v321_v24  ;;  %v2206_v37 = vld [vmem:[%s2163_s9 + $0x10] sm:$0xff]  ;;  %p1930_p6 = scmp.ne.s32.totalorder %s2498_s8, %s1929_s28  ;;  %p2563_p9 = scmp.ne.s32.totalorder %s2556_s11, 0 }
  0x3c   : > { %v800_v31 = vld [vmem:[#allocation2 + $0x80] sm:$0xff]  ;;  %v801_v32 = vld [vmem:[#allocation2 + $0x88] sm:$0xff]  ;;  %v2209_v38 = vld [vmem:[%s2163_s9 + $0x70] sm:$0xff]  ;;  %s2001_s16 = smov [#allocation5]  }
  0x3d   : > { %1737 = vmatpush1.bf16.msra.mxu0 %v1736_v14  ;;  %1845 = vmatpush1.bf16.msra.mxu1 %v1736_v14  ;;  %v1746_v34 = vpack.c.bf16 %v801_v32, %v800_v31  ;;  %v784_v35 = vld [vmem:[#allocation2] sm:$0xff]  ;;  %v785_v36 = vld [vmem:[#allocation2 + $0x8] sm:$0xff]  ;;  %v802_v40 = vld [vmem:[#allocation2 + $0x90] sm:$0xff]  ;;  %p1931_p10 = pnand %p1930_p6, %p2563_p9  ;;  %s1933_s15 = sshll.u32 %s2001_s16, 4  ;;  %s1934_s15 = int_to_ptr.vmem [resolvable:$false] %s1933_s15 }
  0x3e   : > { %1739 = vmatprep.subr.bf16.mxu1 %v1738_v15  ;;  %v1748_v39 = vpack.c.bf16 %v785_v36, %v784_v35  ;;  %v803_v41 = vld [vmem:[#allocation2 + $0x98] sm:$0xff]  ;;  %v786_v42 = vld [vmem:[#allocation2 + $0x10] sm:$0xff]  ;;  %v804_v46 = vld [vmem:[#allocation2 + $0xa0] sm:$0xff]  ;;  %s1935_s13 = scalar_lea.vmem %s1934_s15, 4096  ;;  %p1936_p2 = scmp.lt.s32.totalorder %s2498_s8, %s1934_s15 }
  0x3f   : > { %1747 = vmatprep.subr.bf16.mxu0 %v1746_v34  ;;  %v1750_v43 = vpack.c.bf16 %v803_v41, %v802_v40  ;;  %v787_v44 = vld [vmem:[#allocation2 + $0x18] sm:$0xff]  ;;  %v805_v47 = vld [vmem:[#allocation2 + $0xa8] sm:$0xff]  ;;  %v788_v48 = vld [vmem:[#allocation2 + $0x20] sm:$0xff]  ;;  %p1932_p12 = pneg %p1931_p10  ;;  %p1937_p3 = scmp.lt.s32.totalorder %s1935_s13, %s1929_s28 }
  0x40   : > { %1442 = vmatmul.mubr.msk.f32.vlgmr.msra.gmra.mrb[0].mxu0 %vm349_vm0, %v2178_v20  ;;  %1454 = vmatmul.mubr.msk.f32.vlgmr.msra.gmra.mrb[0].mxu1 %vm349_vm0, %v2181_v21  ;;  %v1752_v45 = vpack.c.bf16 %v787_v44, %v786_v42  ;;  %v789_v49 = vld [vmem:[#allocation2 + $0x28] sm:$0xff]  ;;  %v2220_v50 = vld [vmem:[%s2163_s9 + $0x18] sm:$0xff]  ;;  %v816_v52 = vld [vmem:[#allocation2 + $0x100] sm:$0xff]  ;;  %v1754_v54 = vpack.c.bf16 %v805_v47, %v804_v46 }
  0x41   : > { %1741 = vmatpush1.bf16.msra.mxu1 %v1740_v22  ;;  %468 = vmatprep.mubr.f32.mxu0 %v2000_v0  ;;  %v2223_v51 = vld [vmem:[%s2163_s9 + $0x78] sm:$0xff]  ;;  %v817_v53 = vld [vmem:[#allocation2 + $0x108] sm:$0xff]  ;;  %v834_v55 = vld [vmem:[#allocation2 + $0x190] sm:$0xff]  ;;  %v1756_v56 = vpack.c.bf16 %v789_v49, %v788_v48  ;;  %p1938_p4 = por %p1937_p3, %p1936_p2 }
  0x42   : > { %540 = vmatprep.mubr.f32.mxu1 %v2000_v0  ;;  %1743 = vmatprep.subr.bf16.mxu1 %v1742_v23  ;;  %v806_v57 = vld [vmem:[#allocation2 + $0xb0] sm:$0xff]  ;;  %v807_v58 = vld [vmem:[#allocation2 + $0xb8] sm:$0xff]  ;;  %v2232_v62 = vld [vmem:[%s2163_s9 + $0x20] sm:$0xff]  ;;  %v1780_v63 = vpack.c.bf16 %v817_v53, %v816_v52 }
  0x43   : > { %1749 = vmatpush3.bf16.msra.mxu0 %v1748_v39  ;;  %v835_v59 = vld [vmem:[#allocation2 + $0x198] sm:$0xff]  ;;  %v790_v60 = vld [vmem:[#allocation2 + $0x30] sm:$0xff]  ;;  %v1758_v3 = vpack.c.bf16 %v807_v58, %v806_v57  ;;  %v836_v5 = vld [vmem:[#allocation2 + $0x1a0] sm:$0xff]  ;;  %p1939_p7 = pnand %p1938_p4, %p1932_p12 }
  0x44   : > { %1443 = vmatmul.mubr.msk.f32.gmra.mrb[2].mxu0 %vm349_vm0, %v2195_v28  ;;  %1455 = vmatmul.mubr.msk.f32.gmra.mrb[2].mxu1 %vm349_vm0, %v2198_v29  ;;  %v791_v61 = vld [vmem:[#allocation2 + $0x38] sm:$0xff]  ;;  %v818_v1 = vld [vmem:[#allocation2 + $0x110] sm:$0xff]  ;;  %v1782_v4 = vpack.c.bf16 %v835_v59, %v834_v55  ;;  %v808_v7 = vld [vmem:[#allocation2 + $0xc0] sm:$0xff] }
  0x45   : > { %474 = vmatprep.mubr.f32.mxu0 %v2000_v0  ;;  %546 = vmatprep.mubr.f32.mxu1 %v2000_v0  ;;  %v819_v2 = vld [vmem:[#allocation2 + $0x118] sm:$0xff]  ;;  %v1760_v6 = vpack.c.bf16 %v791_v61, %v790_v60  ;;  %v809_v8 = vld [vmem:[#allocation2 + $0xc8] sm:$0xff]  ;;  %v792_v10 = vld [vmem:[#allocation2 + $0x40] sm:$0xff] }
  0x46   : > { %1745 = vmatpush1.bf16.msra.mxu1 %v1744_v30  ;;  %1751 = vmatprep.subr.bf16.mxu0 %v1750_v43  ;;  %v837_v9 = vld [vmem:[#allocation2 + $0x1a8] sm:$0xff]  ;;  %v1784_v13 = vpack.c.bf16 %v819_v2, %v818_v1  ;;  %v820_v14 = vld [vmem:[#allocation2 + $0x120] sm:$0xff]  ;;  %v1762_v16 = vpack.c.bf16 %v809_v8, %v808_v7  ;;  %v838_v18 = vld [vmem:[#allocation2 + $0x1b0] sm:$0xff] }
  0x47   : > { %1779 = vmatprep.subr.bf16.mxu1 %v1778_v33  ;;  %1753 = vmatpush3.bf16.msra.mxu0 %v1752_v45  ;;  %v793_v11 = vld [vmem:[#allocation2 + $0x48] sm:$0xff]  ;;  %v1786_v17 = vpack.c.bf16 %v837_v9, %v836_v5  ;;  %v811_v22 = vld [vmem:[#allocation2 + $0xd8] sm:$0xff]  ;;  %v794_v24 = vld [vmem:[#allocation2 + $0x50] sm:$0xff] }
  0x48   : > { %1444 = vmatmul.mubr.msk.f32.gmra.mrb[4].mxu0 %vm349_vm0, %v2206_v37  ;;  %1456 = vmatmul.mubr.msk.f32.gmra.mrb[4].mxu1 %vm349_vm0, %v2209_v38  ;;  %v2241_v12 = vld [vmem:[%s2163_s9 + $0x28] sm:$0xff]  ;;  %v1764_v19 = vpack.c.bf16 %v793_v11, %v792_v10  ;;  %v839_v23 = vld [vmem:[#allocation2 + $0x1b8] sm:$0xff]  ;;  %v301_v26 = vld [vmem:[%s2163_s9 + $0x30] sm:$0xff] }
  0x49   : > { %480 = vmatprep.mubr.f32.mxu0 %v2000_v0  ;;  %552 = vmatprep.mubr.f32.mxu1 %v2000_v0  ;;  %v821_v15 = vld [vmem:[#allocation2 + $0x128] sm:$0xff]  ;;  %v795_v25 = vld [vmem:[#allocation2 + $0x58] sm:$0xff]  ;;  %v822_v30 = vld [vmem:[#allocation2 + $0x130] sm:$0xff]  ;;  %v1790_v32 = vpack.c.bf16 %v839_v23, %v838_v18 }
  0x4a   : > { %1755 = vmatprep.subr.bf16.mxu0 %v1754_v54  ;;  %v1788_v27 = vpack.c.bf16 %v821_v15, %v820_v14  ;;  %v823_v33 = vld [vmem:[#allocation2 + $0x138] sm:$0xff]  ;;  %v1768_v34 = vpack.c.bf16 %v795_v25, %v794_v24  ;;  %v813_v35 = vld [vmem:[#allocation2 + $0xe8] sm:$0xff]  ;;  %v840_v36 = vld [vmem:[#allocation2 + $0x1c0] sm:$0xff] }
  0x4b   : > { %1757 = vmatpush3.bf16.msra.mxu0 %v1756_v56  ;;  %v841_v39 = vld [vmem:[#allocation2 + $0x1c8] sm:$0xff]  ;;  %v302_v40 = vld [vmem:[%s2163_s9 + $0x38] sm:$0xff]  ;;  %v1792_v41 = vpack.c.bf16 %v823_v33, %v822_v30  ;;  %v824_v44 = vld [vmem:[#allocation2 + $0x140] sm:$0xff] }
  0x4c   : > { %1445 = vmatmul.mubr.msk.f32.gmra.mrb[6].mxu0 %vm349_vm0, %v2220_v50  ;;  %1457 = vmatmul.mubr.msk.f32.gmra.mrb[6].mxu1 %vm349_vm0, %v2223_v51  ;;  %v1794_v43 = vpack.c.bf16 %v841_v39, %v840_v36  ;;  %v825_v45 = vld [vmem:[#allocation2 + $0x148] sm:$0xff]  ;;  %v843_v46 = vld [vmem:[#allocation2 + $0x1d8] sm:$0xff]  ;;  %v303_v47 = vld [vmem:[%s2163_s9 + $0x40] sm:$0xff] }
  0x4d   : > { %486 = vmatprep.mubr.f32.mxu0 %v2000_v0  ;;  %623 = vmatprep.mubr.f32.mxu1 %v2000_v0  ;;  %v1796_v48 = vpack.c.bf16 %v825_v45, %v824_v44  ;;  %v305_v52 = vld [vmem:[%s2163_s9 + $0x50] sm:$0xff]  ;;  %v306_v53 = vld [vmem:[%s2163_s9 + $0x58] sm:$0xff]  ;;  %v796_v54 = vld [vmem:[#allocation2 + $0x60] sm:$0xff] }
  0x4e   : > { %1759 = vmatprep.subr.bf16.mxu0 %v1758_v3  ;;  %v797_v55 = vld [vmem:[#allocation2 + $0x68] sm:$0xff]  ;;  %v815_v57 = vld [vmem:[#allocation2 + $0xf8] sm:$0xff]  ;;  %v798_v59 = vld [vmem:[#allocation2 + $0x70] sm:$0xff] }
  0x4f   : > { %1761 = vmatpush3.bf16.msra.mxu0 %v1760_v6  ;;  %v1772_v56 = vpack.c.bf16 %v797_v55, %v796_v54  ;;  %v799_v60 = vld [vmem:[#allocation2 + $0x78] sm:$0xff]  ;;  %v826_v61 = vld [vmem:[#allocation2 + $0x150] sm:$0xff]  ;;  %v829_v2 = vld [vmem:[#allocation2 + $0x168] sm:$0xff] }
  0x50   : > { %1446 = vmatmul.mubr.msk.f32.gmra.mrb[8].mxu0 %vm349_vm0, %v2232_v62  ;;  %1458 = vmatmul.mubr.msk.f32.vlgmr.msra.gmra.mrb[8].mxu1 %vm349_vm0, %v2178_v20  ;;  %v810_v20 = vld [vmem:[#allocation2 + $0xd0] sm:$0xff]  ;;  %v847_v5 = vld [vmem:[#allocation2 + $0x1f8] sm:$0xff]  ;;  %v1161_v10 = vld [vmem:[%s2550_s5] sm:$0xff] }
  0x51   : > { %492 = vmatprep.mubr.f32.mxu0 %v2000_v0  ;;  %629 = vmatprep.mubr.f32.mxu1 %v2000_v0  ;;  %v1766_v31 = vpack.c.bf16 %v811_v22, %v810_v20  ;;  %v830_v7 = vld [vmem:[#allocation2 + $0x170] sm:$0xff]  ;;  %v831_v8 = vld [vmem:[#allocation2 + $0x178] sm:$0xff]  ;;  %v1162_v11 = vld [vmem:[%s2550_s5 + $0x8] sm:$0xff] }
  0x52   : > { %1781 = vmatpush3.bf16.msra.mxu1 %v1780_v63  ;;  %1763 = vmatprep.subr.bf16.mxu0 %v1762_v16  ;;  %v1808_v9 = vpack.c.bf16 %v831_v8, %v830_v7  ;;  %v327_v16 = vld [vmem:[%s2547_s2] sm:$0xf]  ;;  %v1164_v30 = vld [vmem:[%s2550_s5 + $0x18] sm:$0xff]  ;;  %v1167_v54 = vld [vmem:[%s2550_s5 + $0x30] sm:$0xff] }
  0x53   : > { %1783 = vmatprep.subr.bf16.mxu1 %v1782_v4  ;;  %1765 = vmatpush3.bf16.msra.mxu0 %v1764_v19  ;;  %v846_v4 = vld [vmem:[#allocation2 + $0x1f0] sm:$0xff]  ;;  %v1168_v55 = vld [vmem:[%s2550_s5 + $0x38] sm:$0xff] }
  0x54   : > { %1447 = vmatmul.mubr.msk.f32.gmra.mrb[10].mxu0 %vm349_vm0, %v2241_v12  ;;  %1459 = vmatmul.mubr.msk.f32.gmra.mrb[10].mxu1 %vm349_vm0, %v2195_v28  ;;  %v812_v28 = vld [vmem:[#allocation2 + $0xe0] sm:$0xff]  ;;  %v1806_v6 = vpack.c.bf16 %v847_v5, %v846_v4 }
  0x55   : > { %498 = vmatprep.mubr.f32.mxu0 %v2000_v0  ;;  %635 = vmatprep.mubr.f32.mxu1 %v2000_v0  ;;  %v1770_v42 = vpack.c.bf16 %v813_v35, %v812_v28 }
  0x56   : > { %1785 = vmatpush3.bf16.msra.mxu1 %v1784_v13  ;;  %1767 = vmatprep.subr.bf16.mxu0 %v1766_v31  ;;  %v329_v13 = vlaneseq }
  0x57   : > { %1787 = vmatprep.subr.bf16.mxu1 %v1786_v17  ;;  %1769 = vmatpush3.bf16.msra.mxu0 %v1768_v34 }
  0x58   : > { %1448 = vmatmul.mubr.msk.f32.gmra.mrb[12].mxu0 %vm349_vm0, %v301_v26  ;;  %1460 = vmatmul.mubr.msk.f32.gmra.mrb[12].mxu1 %vm349_vm0, %v2206_v37  ;;  %v842_v37 = vld [vmem:[#allocation2 + $0x1d0] sm:$0xff]  ;;  %v330_v14 = vshrl.u32 %v329_v13, 7 }
  0x59   : > { %504 = vmatprep.mubr.f32.mxu0 %v2000_v0  ;;  %641 = vmatprep.mubr.f32.mxu1 %v2000_v0  ;;  %v1798_v49 = vpack.c.bf16 %v843_v46, %v842_v37 }
  0x5a   : > { %1789 = vmatpush3.bf16.msra.mxu1 %v1788_v27  ;;  %1771 = vmatprep.subr.bf16.mxu0 %v1770_v42  ;;  %v335_v15 = vsub.s32 1, %v330_v14  ;;  %v331_v17 = vsub.s32 0, %v330_v14  ;;  %v1163_v27 = vld [vmem:[%s2550_s5 + $0x10] sm:$0xff]  ;;  %v1166_v42 = vld [vmem:[%s2550_s5 + $0x28] sm:$0xff] }
  0x5b   : > { %1791 = vmatprep.subr.bf16.mxu1 %v1790_v32  ;;  %1773 = vmatpush3.bf16.msra.mxu0 %v1772_v56  ;;  %v1814_v39 = vpack.c.bf16 %v1164_v30, %v1163_v27 }
  0x5c   : > { %1449 = vmatmul.mubr.msk.f32.gmra.mrb[14].mxu0 %vm349_vm0, %v302_v40  ;;  %1461 = vmatmul.mubr.msk.f32.gmra.mrb[14].mxu1 %vm349_vm0, %v2220_v50  ;;  %v304_v50 = vld [vmem:[%s2163_s9 + $0x48] sm:$0xff]  ;;  %v2310_v18 = vrot.slane %v327_v16, %v335_v15  ;;  %v2312_v19 = vrot.slane %v327_v16, %v331_v17 }
  0x5d   : > { %510 = vmatprep.mubr.f32.mxu0 %v2000_v0  ;;  %647 = vmatprep.mubr.f32.mxu1 %v2000_v0 }
  0x5e   : > { %1793 = vmatpush3.bf16.msra.mxu1 %v1792_v41  ;;  %v1165_v41 = vld [vmem:[%s2550_s5 + $0x20] sm:$0xff] }
  0x5f   : > { %1795 = vmatprep.subr.bf16.mxu1 %v1794_v43 }
  0x60   : > { %1450 = vmatmul.mubr.msk.f32.gmra.mrb[16].mxu0 %vm349_vm0, %v303_v47  ;;  %1462 = vmatmul.mubr.msk.f32.gmra.mrb[16].mxu1 %vm349_vm0, %v2232_v62  ;;  %v827_v62 = vld [vmem:[#allocation2 + $0x158] sm:$0xff] }
  0x61   : > { %516 = vmatprep.mubr.f32.mxu0 %v2000_v0  ;;  %653 = vmatprep.mubr.f32.mxu1 %v2000_v0  ;;  %v1800_v63 = vpack.c.bf16 %v827_v62, %v826_v61  ;;  %v1822_v62 = vpack.c.bf16 %v1168_v55, %v1167_v54 }
  0x62   : > { %1797 = vmatpush3.bf16.msra.mxu1 %v1796_v48 }
  0x63   : > { %1799 = vmatprep.subr.bf16.mxu1 %v1798_v49  ;;  %v339_v49 = vsub.s32 2, %v330_v14 }
  0x64   : > { %1451 = vmatmul.mubr.msk.f32.gmra.mrb[18].mxu0 %vm349_vm0, %v304_v50  ;;  %1463 = vmatmul.mubr.msk.f32.gmra.mrb[18].mxu1 %vm349_vm0, %v2241_v12  ;;  %v1810_v12 = vpack.c.bf16 %v1162_v11, %v1161_v10 }
  0x65   : > { %522 = vmatprep.mubr.f32.mxu0 %v2000_v0  ;;  %659 = vmatprep.mubr.f32.mxu1 %v2000_v0  ;;  %v2355_v61 = vrot.slane %v327_v16, %v339_v49 }
  0x66   : > { %1801 = vmatpush3.bf16.msra.mxu1 %v1800_v63 }
  0x68   : > { %1452 = vmatmul.mubr.msk.f32.gmra.mrb[20].mxu0 %vm349_vm0, %v305_v52  ;;  %1464 = vmatmul.mubr.msk.f32.gmra.mrb[20].mxu1 %vm349_vm0, %v301_v26 }
  0x69   : > { %528 = vmatprep.mubr.f32.mxu0 %v2000_v0  ;;  %665 = vmatprep.mubr.f32.mxu1 %v2000_v0 }
  0x6c   : > { %1453 = vmatmul.mubr.msk.f32.gmra.mrb[22].mxu0 %vm349_vm0, %v306_v53  ;;  %1465 = vmatmul.mubr.msk.f32.gmra.mrb[22].mxu1 %vm349_vm0, %v302_v40 }
  0x6d   : > { %671 = vmatprep.mubr.f32.mxu1 %v2000_v0 }
  0x70   : > { %1466 = vmatmul.mubr.msk.f32.gmra.mrb[24].mxu1 %vm349_vm0, %v303_v47 }
  0x71   : > { %677 = vmatprep.mubr.f32.mxu1 %v2000_v0 }
  0x74   : > { %1467 = vmatmul.mubr.msk.f32.gmra.mrb[26].mxu1 %vm349_vm0, %v304_v50  ;;  %v1818_v50 = vpack.c.bf16 %v1166_v42, %v1165_v41 }
  0x75   : > { %683 = vmatprep.mubr.f32.mxu1 %v2000_v0 }
  0x78   : > { %1468 = vmatmul.mubr.msk.f32.gmra.mrb[28].mxu1 %vm349_vm0, %v305_v52 }
  0x79   : > { %689 = vmatprep.mubr.f32.mxu1 %v2000_v0 }
  0x7c   : > { %1469 = vmatmul.mubr.msk.f32.gmra.mrb[30].mxu1 %vm349_vm0, %v306_v53  ;;  %v343_v53 = vsub.s32 3, %v330_v14 }
  0x7d   : > { %695 = vmatprep.mubr.f32.mxu1 %v2000_v0 }
  0x80   : > { %1470 = vmatmul.mubr.msk.f32.gmra.mrb[32].mxu1 %vm349_vm0, %v2181_v21  ;;  %v814_v21 = vld [vmem:[#allocation2 + $0xf0] sm:$0xff] }
  0x81   : > { %701 = vmatprep.mubr.f32.mxu1 %v2000_v0  ;;  %v1774_v58 = vpack.c.bf16 %v815_v57, %v814_v21 }
  0x83   : > { %1775 = vmatprep.subr.bf16.mxu0 %v1774_v58 }
  0x84   : > { %1471 = vmatmul.mubr.msk.f32.gmra.mrb[34].mxu1 %vm349_vm0, %v2198_v29  ;;  %v1776_v29 = vpack.c.bf16 %v799_v60, %v798_v59 }
  0x85   : > { %707 = vmatprep.mubr.f32.mxu1 %v2000_v0 }
  0x86   : > { %1777 = vmatpush3.bf16.msra.mxu0 %v1776_v29 }
  0x87   : > { %1811 = vmatprep.subr.bf16.mxu0 %v1810_v12 }
  0x88   : > { %1472 = vmatmul.mubr.msk.f32.gmra.mrb[36].mxu1 %vm349_vm0, %v2209_v38  ;;  %v845_v38 = vld [vmem:[#allocation2 + $0x1e8] sm:$0xff] }
  0x89   : > { %713 = vmatprep.mubr.f32.mxu1 %v2000_v0  ;;  %v844_v0 = vld [vmem:[#allocation2 + $0x1e0] sm:$0xff] }
  0x8a   : > { %v1802_v1 = vpack.c.bf16 %v845_v38, %v844_v0  ;;  %v2358_v0 = vrot.slane %v327_v16, %v343_v53 }
  0x8c   : > { %1473 = vmatmul.mubr.msk.f32.gmra.mrb[38].mxu1 %vm349_vm0, %v2223_v51  ;;  %1803 = vmatprep.subr.bf16.mxu1 %v1802_v1  ;;  %v828_v51 = vld [vmem:[#allocation2 + $0x160] sm:$0xff] }
  0x8d   : > { %v1804_v3 = vpack.c.bf16 %v829_v2, %v828_v51 }
  0x8f   : > { %1805 = vmatpush3.bf16.msra.mxu1 %v1804_v3 }
  0x90   : > { %1807 = vmatprep.subr.bf16.mxu1 %v1806_v6 }
  0x93   : > { %1809 = vmatpush3.bf16.msra.mxu1 %v1808_v9 }
 0x113   : > { %v464_v20 = vpop.f32.mrb[0].mxu0  ;;  %v2314_v22 = vpop.f32.mrb[0].mxu1 }
 0x114   : > { %v465_v23 = vadd.f32 %v464_v20, %v2312_v19  ;;  %v466_v24 = vpop.f32.mrb[1].mxu0  ;;  %v2317_v25 = vpop.f32.mrb[1].mxu1 }
 0x115   : > { %v467_v26 = vadd.f32 %v466_v24, %v2310_v18 }
 0x116   : > { %v720_v31 = vmax.f32 %v465_v23, 0.0 }
 0x117   : > { %v721_v32 = vmax.f32 %v467_v26, 0.0  ;;  %v470_v33 = vpop.f32.mrb[2].mxu0  ;;  %v2326_v34 = vpop.f32.mrb[2].mxu1 }
 0x118   : > { %v471_v28 = vadd.f32 %v470_v33, %v2312_v19  ;;  %v472_v35 = vpop.f32.mrb[3].mxu0  ;;  %v2329_v36 = vpop.f32.mrb[3].mxu1 }
 0x119   : > { %v473_v40 = vadd.f32 %v472_v35, %v2310_v18  ;;  %919 = vmatprep.mubr.f32.mxu0 %v721_v32 }
 0x11a   : > { %v724_v43 = vmax.f32 %v471_v28, 0.0  ;;  %920 = vmatmul.mubr.f32.vlgmr.msra.gmra.mrb[24].mxu0 %v720_v31 }
 0x11b   : > { %v725_v44 = vmax.f32 %v473_v40, 0.0  ;;  %v476_v45 = vpop.f32.mrb[4].mxu0  ;;  %v2338_v37 = vpop.f32.mrb[4].mxu1  ;;  %1813 = vmatpush3.bf16.msra.mxu0 %v1810_v12 }
 0x11c   : > { %v477_v46 = vadd.f32 %v476_v45, %v2312_v19  ;;  %v478_v47 = vpop.f32.mrb[5].mxu0  ;;  %v2341_v48 = vpop.f32.mrb[5].mxu1  ;;  %1815 = vmatprep.subr.bf16.mxu0 %v1814_v39 }
 0x11d   : > { %v479_v52 = vadd.f32 %v478_v47, %v2310_v18  ;;  %924 = vmatprep.mubr.f32.mxu0 %v725_v44 }
 0x11e   : > { %v728_v56 = vmax.f32 %v477_v46, 0.0  ;;  %925 = vmatmul.mubr.f32.gmra.mrb[26].mxu0 %v724_v43 }
 0x11f   : > { %v729_v21 = vmax.f32 %v479_v52, 0.0  ;;  %v482_v57 = vpop.f32.mrb[6].mxu0  ;;  %v2350_v58 = vpop.f32.mrb[6].mxu1  ;;  %1817 = vmatpush3.bf16.msra.mxu0 %v1814_v39 }
 0x120   : > { %v483_v59 = vadd.f32 %v482_v57, %v2312_v19  ;;  %v484_v60 = vpop.f32.mrb[7].mxu0  ;;  %v2353_v29 = vpop.f32.mrb[7].mxu1  ;;  %1819 = vmatprep.subr.bf16.mxu0 %v1818_v50 }
 0x121   : > { %v485_v63 = vadd.f32 %v484_v60, %v2310_v18  ;;  %929 = vmatprep.mubr.f32.mxu0 %v729_v21 }
 0x122   : > { %v732_v38 = vmax.f32 %v483_v59, 0.0  ;;  %930 = vmatmul.mubr.f32.gmra.mrb[28].mxu0 %v728_v56 }
 0x123   : > { %v733_v1 = vmax.f32 %v485_v63, 0.0  ;;  %v488_v51 = vpop.f32.mrb[8].mxu0  ;;  %v625_v2 = vpop.f32.mrb[8].mxu1  ;;  %1821 = vmatpush3.bf16.msra.mxu0 %v1818_v50 }
 0x124   : > { %v489_v3 = vadd.f32 %v488_v51, %v2312_v19  ;;  %v626_v4 = vadd.f32 %v625_v2, %v2355_v61  ;;  %v490_v5 = vpop.f32.mrb[9].mxu0  ;;  %v627_v6 = vpop.f32.mrb[9].mxu1  ;;  %1823 = vmatprep.subr.bf16.mxu0 %v1822_v62 }
 0x125   : > { %v491_v7 = vadd.f32 %v490_v5, %v2310_v18  ;;  %v628_v8 = vadd.f32 %v627_v6, %v2358_v0  ;;  %934 = vmatprep.mubr.f32.mxu0 %v733_v1 }
 0x126   : > { %v736_v9 = vmax.f32 %v489_v3, 0.0  ;;  %935 = vmatmul.mubr.f32.gmra.mrb[30].mxu0 %v732_v38  ;;  %v722_v14 = vmax.f32 %v626_v4, 0.0 }
 0x127   : > { %v737_v10 = vmax.f32 %v491_v7, 0.0  ;;  %v723_v11 = vmax.f32 %v628_v8, 0.0  ;;  %v494_v12 = vpop.f32.mrb[10].mxu0  ;;  %v631_v13 = vpop.f32.mrb[10].mxu1  ;;  %1825 = vmatpush3.bf16.msra.mxu0 %v1822_v62 }
 0x128   : > { %v495_v15 = vadd.f32 %v494_v12, %v2312_v19  ;;  %v632_v16 = vadd.f32 %v631_v13, %v2355_v61  ;;  %v496_v17 = vpop.f32.mrb[11].mxu0  ;;  %v633_v20 = vpop.f32.mrb[11].mxu1 }
 0x129   : > { %v497_v23 = vadd.f32 %v496_v17, %v2310_v18  ;;  %v634_v24 = vadd.f32 %v633_v20, %v2358_v0  ;;  %939 = vmatprep.mubr.f32.mxu0 %v737_v10  ;;  %1064 = vmatprep.mubr.f32.mxu1 %v723_v11 }
 0x12a   : > { %v740_v26 = vmax.f32 %v495_v15, 0.0  ;;  %940 = vmatmul.mubr.f32.gmra.mrb[32].mxu0 %v736_v9  ;;  %1065 = vmatmul.mubr.f32.vlgmr.msra.gmra.mrb[40].mxu1 %v722_v14  ;;  %v726_v33 = vmax.f32 %v632_v16, 0.0 }
 0x12b   : > { %v741_v27 = vmax.f32 %v497_v23, 0.0  ;;  %v727_v30 = vmax.f32 %v634_v24, 0.0  ;;  %v500_v31 = vpop.f32.mrb[12].mxu0  ;;  %v637_v32 = vpop.f32.mrb[12].mxu1 }
 0x12c   : > { %v501_v28 = vadd.f32 %v500_v31, %v2312_v19  ;;  %v638_v35 = vadd.f32 %v637_v32, %v2355_v61  ;;  %v502_v39 = vpop.f32.mrb[13].mxu0  ;;  %v639_v40 = vpop.f32.mrb[13].mxu1 }
 0x12d   : > { %v503_v41 = vadd.f32 %v502_v39, %v2310_v18  ;;  %v640_v42 = vadd.f32 %v639_v40, %v2358_v0  ;;  %944 = vmatprep.mubr.f32.mxu0 %v741_v27  ;;  %1069 = vmatprep.mubr.f32.mxu1 %v727_v30 }
 0x12e   : > { %v744_v43 = vmax.f32 %v501_v28, 0.0  ;;  %945 = vmatmul.mubr.f32.gmra.mrb[34].mxu0 %v740_v26  ;;  %1070 = vmatmul.mubr.f32.gmra.mrb[42].mxu1 %v726_v33  ;;  %v730_v49 = vmax.f32 %v638_v35, 0.0 }
 0x12f   : > { %v745_v44 = vmax.f32 %v503_v41, 0.0  ;;  %v731_v45 = vmax.f32 %v640_v42, 0.0  ;;  %v506_v46 = vpop.f32.mrb[14].mxu0  ;;  %v643_v47 = vpop.f32.mrb[14].mxu1 }
 0x130   : > { %v507_v50 = vadd.f32 %v506_v46, %v2312_v19  ;;  %v644_v52 = vadd.f32 %v643_v47, %v2355_v61  ;;  %v508_v53 = vpop.f32.mrb[15].mxu0  ;;  %v645_v54 = vpop.f32.mrb[15].mxu1 }
 0x131   : > { %v509_v55 = vadd.f32 %v508_v53, %v2310_v18  ;;  %v646_v56 = vadd.f32 %v645_v54, %v2358_v0  ;;  %949 = vmatprep.mubr.f32.mxu0 %v745_v44  ;;  %1074 = vmatprep.mubr.f32.mxu1 %v731_v45 }
 0x132   : > { %v748_v21 = vmax.f32 %v507_v50, 0.0  ;;  %950 = vmatmul.mubr.f32.gmra.mrb[36].mxu0 %v744_v43  ;;  %1075 = vmatmul.mubr.f32.gmra.mrb[44].mxu1 %v730_v49  ;;  %v734_v63 = vmax.f32 %v644_v52, 0.0  ;;  %v539_v50 = vadd.f32 %v2317_v25, %v2310_v18 }
 0x133   : > { %v749_v57 = vmax.f32 %v509_v55, 0.0  ;;  %v735_v59 = vmax.f32 %v646_v56, 0.0  ;;  %v512_v60 = vpop.f32.mrb[16].mxu0  ;;  %v649_v62 = vpop.f32.mrb[16].mxu1 }
 0x134   : > { %v513_v38 = vadd.f32 %v512_v60, %v2312_v19  ;;  %v650_v1 = vadd.f32 %v649_v62, %v2355_v61  ;;  %v514_v51 = vpop.f32.mrb[17].mxu0  ;;  %v651_v2 = vpop.f32.mrb[17].mxu1  ;;  %v769_v25 = vmax.f32 %v539_v50, 0.0 }
 0x135   : > { %v515_v3 = vadd.f32 %v514_v51, %v2310_v18  ;;  %v652_v4 = vadd.f32 %v651_v2, %v2358_v0  ;;  %954 = vmatprep.mubr.f32.mxu0 %v749_v57  ;;  %1079 = vmatprep.mubr.f32.mxu1 %v735_v59  ;;  %v537_v57 = vadd.f32 %v2314_v22, %v2312_v19 }
 0x136   : > { %v752_v5 = vmax.f32 %v513_v38, 0.0  ;;  %955 = vmatmul.mubr.f32.gmra.mrb[38].mxu0 %v748_v21  ;;  %1080 = vmatmul.mubr.f32.gmra.mrb[46].mxu1 %v734_v63  ;;  %v738_v10 = vmax.f32 %v650_v1, 0.0  ;;  %v545_v63 = vadd.f32 %v2329_v36, %v2310_v18  ;;  %v543_v22 = vadd.f32 %v2326_v34, %v2312_v19 }
 0x137   : > { %v753_v6 = vmax.f32 %v515_v3, 0.0  ;;  %v739_v7 = vmax.f32 %v652_v4, 0.0  ;;  %v518_v8 = vpop.f32.mrb[18].mxu0  ;;  %v655_v9 = vpop.f32.mrb[18].mxu1  ;;  %v768_v2 = vmax.f32 %v537_v57, 0.0  ;;  %v551_v36 = vadd.f32 %v2341_v48, %v2310_v18 }
 0x138   : > { %v519_v11 = vadd.f32 %v518_v8, %v2312_v19  ;;  %v656_v12 = vadd.f32 %v655_v9, %v2355_v61  ;;  %v520_v13 = vpop.f32.mrb[19].mxu0  ;;  %v657_v14 = vpop.f32.mrb[19].mxu1  ;;  %v549_v34 = vadd.f32 %v2338_v37, %v2312_v19  ;;  %v557_v48 = vadd.f32 %v2353_v29, %v2310_v18 }
 0x139   : > { %v521_v15 = vadd.f32 %v520_v13, %v2310_v18  ;;  %v658_v16 = vadd.f32 %v657_v14, %v2358_v0  ;;  %959 = vmatprep.mubr.f32.mxu0 %v753_v6  ;;  %1084 = vmatprep.mubr.f32.mxu1 %v739_v7  ;;  %v773_v6 = vmax.f32 %v545_v63, 0.0  ;;  %v777_v14 = vmax.f32 %v551_v36, 0.0  ;;  %v1173_v63 = vld [vmem:[%s2550_s5 + $0x60] sm:$0xff] }
 0x13a   : > { %v756_v17 = vmax.f32 %v519_v11, 0.0  ;;  %960 = vmatmul.mubr.f32.gmra.mrb[40].mxu0 %v752_v5  ;;  %1085 = vmatmul.mubr.f32.gmra.mrb[48].mxu1 %v738_v10  ;;  %v742_v27 = vmax.f32 %v656_v12, 0.0  ;;  %v772_v10 = vmax.f32 %v543_v22, 0.0  ;;  %v555_v37 = vadd.f32 %v2350_v58, %v2312_v19 }
 0x13b   : > { %v757_v20 = vmax.f32 %v521_v15, 0.0  ;;  %v743_v23 = vmax.f32 %v658_v16, 0.0  ;;  %v524_v24 = vpop.f32.mrb[20].mxu0  ;;  %v661_v26 = vpop.f32.mrb[20].mxu1 }
 0x13c   : > { %v525_v30 = vadd.f32 %v524_v24, %v2312_v19  ;;  %v662_v31 = vadd.f32 %v661_v26, %v2355_v61  ;;  %v526_v32 = vpop.f32.mrb[21].mxu0  ;;  %v663_v33 = vpop.f32.mrb[21].mxu1 }
 0x13d   : > { %v527_v28 = vadd.f32 %v526_v32, %v2310_v18  ;;  %v664_v35 = vadd.f32 %v663_v33, %v2358_v0  ;;  %964 = vmatprep.mubr.f32.mxu0 %v757_v20  ;;  %1089 = vmatprep.mubr.f32.mxu1 %v743_v23  ;;  %v776_v20 = vmax.f32 %v549_v34, 0.0 }
 0x13e   : > { %v760_v39 = vmax.f32 %v525_v30, 0.0  ;;  %965 = vmatmul.mubr.f32.gmra.mrb[42].mxu0 %v756_v17  ;;  %1090 = vmatmul.mubr.f32.gmra.mrb[50].mxu1 %v742_v27  ;;  %v746_v44 = vmax.f32 %v662_v31, 0.0  ;;  %v781_v27 = vmax.f32 %v557_v48, 0.0  ;;  %v780_v31 = vmax.f32 %v555_v37, 0.0 }
 0x13f   : > { %v761_v40 = vmax.f32 %v527_v28, 0.0  ;;  %v747_v41 = vmax.f32 %v664_v35, 0.0  ;;  %v530_v42 = vpop.f32.mrb[22].mxu0  ;;  %v667_v43 = vpop.f32.mrb[22].mxu1 }
 0x140   : > { %v531_v45 = vadd.f32 %v530_v42, %v2312_v19  ;;  %v668_v46 = vadd.f32 %v667_v43, %v2355_v61  ;;  %v532_v47 = vpop.f32.mrb[23].mxu0  ;;  %v669_v49 = vpop.f32.mrb[23].mxu1 }
 0x141   : > { %v533_v52 = vadd.f32 %v532_v47, %v2310_v18  ;;  %v670_v53 = vadd.f32 %v669_v49, %v2358_v0  ;;  %969 = vmatprep.mubr.f32.mxu0 %v761_v40  ;;  %1094 = vmatprep.mubr.f32.mxu1 %v747_v41 }
 0x142   : > { %v764_v54 = vmax.f32 %v531_v45, 0.0  ;;  %970 = vmatmul.mubr.f32.gmra.mrb[44].mxu0 %v760_v39  ;;  %1095 = vmatmul.mubr.f32.gmra.mrb[52].mxu1 %v746_v44  ;;  %v750_v59 = vmax.f32 %v668_v46, 0.0 }
 0x143   : > { %v765_v55 = vmax.f32 %v533_v52, 0.0  ;;  %v751_v56 = vmax.f32 %v670_v53, 0.0  ;;  %v673_v21 = vpop.f32.mrb[24].mxu1 }
 0x144   : > { %v674_v60 = vadd.f32 %v673_v21, %v2355_v61  ;;  %v675_v62 = vpop.f32.mrb[25].mxu1 }
 0x145   : > { %v676_v38 = vadd.f32 %v675_v62, %v2358_v0  ;;  %974 = vmatprep.mubr.f32.mxu0 %v765_v55  ;;  %1099 = vmatprep.mubr.f32.mxu1 %v751_v56 }
 0x146   : > { %975 = vmatmul.mubr.f32.gmra.mrb[46].mxu0 %v764_v54  ;;  %1100 = vmatmul.mubr.f32.gmra.mrb[54].mxu1 %v750_v59  ;;  %v754_v3 = vmax.f32 %v674_v60, 0.0  ;;  %v1169_v59 = vld [vmem:[%s2550_s5 + $0x40] sm:$0xff]  ;;  %v1170_v60 = vld [vmem:[%s2550_s5 + $0x48] sm:$0xff] }
 0x147   : > { %v755_v1 = vmax.f32 %v676_v38, 0.0  ;;  %v679_v51 = vpop.f32.mrb[26].mxu1  ;;  %979 = vmatprep.mubr.f32.mxu0 %v769_v25  ;;  %v1826_v62 = vpack.c.bf16 %v1170_v60, %v1169_v59  ;;  %v1174_v38 = vld [vmem:[%s2550_s5 + $0x68] sm:$0xff] }
 0x148   : > { %v680_v4 = vadd.f32 %v679_v51, %v2355_v61  ;;  %v681_v5 = vpop.f32.mrb[27].mxu1  ;;  %v1175_v51 = vld [vmem:[%s2550_s5 + $0x70] sm:$0xff] }
 0x149   : > { %v682_v7 = vadd.f32 %v681_v5, %v2358_v0  ;;  %1104 = vmatprep.mubr.f32.mxu1 %v755_v1  ;;  %1827 = vmatprep.subr.bf16.mxu0 %v1826_v62  ;;  %v1834_v1 = vpack.c.bf16 %v1174_v38, %v1173_v63 }
 0x14a   : > { %980 = vmatmul.mubr.f32.gmra.mrb[48].mxu0 %v768_v2  ;;  %1105 = vmatmul.mubr.f32.gmra.mrb[56].mxu1 %v754_v3  ;;  %v758_v11 = vmax.f32 %v680_v4, 0.0  ;;  %v1176_v2 = vld [vmem:[%s2550_s5 + $0x78] sm:$0xff] }
 0x14b   : > { %v759_v8 = vmax.f32 %v682_v7, 0.0  ;;  %v685_v9 = vpop.f32.mrb[28].mxu1  ;;  %984 = vmatprep.mubr.f32.mxu0 %v773_v6  ;;  %1829 = vmatpush3.bf16.msra.mxu0 %v1826_v62  ;;  %v1838_v22 = vpack.c.bf16 %v1176_v2, %v1175_v51 }
 0x14c   : > { %v686_v12 = vadd.f32 %v685_v9, %v2355_v61  ;;  %v687_v13 = vpop.f32.mrb[29].mxu1 }
 0x14d   : > { %v688_v15 = vadd.f32 %v687_v13, %v2358_v0  ;;  %1109 = vmatprep.mubr.f32.mxu1 %v759_v8  ;;  %v2451_v13 = vld [vmem:[%s2549_s4] ss:$0 sm:$0xff] }
 0x14e   : > { %985 = vmatmul.mubr.f32.gmra.mrb[50].mxu0 %v772_v10  ;;  %1110 = vmatmul.mubr.f32.gmra.mrb[58].mxu1 %v758_v11  ;;  %v762_v23 = vmax.f32 %v686_v12, 0.0 }
 0x14f   : > { %v763_v16 = vmax.f32 %v688_v15, 0.0  ;;  %v691_v17 = vpop.f32.mrb[30].mxu1  ;;  %989 = vmatprep.mubr.f32.mxu0 %v777_v14 }
 0x150   : > { %v692_v24 = vadd.f32 %v691_v17, %v2355_v61  ;;  %v693_v26 = vpop.f32.mrb[31].mxu1 }
 0x151   : > { %v694_v30 = vadd.f32 %v693_v26, %v2358_v0  ;;  %1114 = vmatprep.mubr.f32.mxu1 %v763_v16 }
 0x152   : > { %990 = vmatmul.mubr.f32.gmra.mrb[52].mxu0 %v776_v20  ;;  %1115 = vmatmul.mubr.f32.gmra.mrb[60].mxu1 %v762_v23  ;;  %v766_v32 = vmax.f32 %v692_v24, 0.0 }
 0x153   : > { %v767_v18 = vmax.f32 %v694_v30, 0.0  ;;  %v697_v29 = vpop.f32.mrb[32].mxu1  ;;  %994 = vmatprep.mubr.f32.mxu0 %v781_v27 }
 0x154   : > { %v698_v33 = vadd.f32 %v697_v29, %v2355_v61  ;;  %v699_v28 = vpop.f32.mrb[33].mxu1 }
 0x155   : > { %v700_v19 = vadd.f32 %v699_v28, %v2358_v0  ;;  %1119 = vmatprep.mubr.f32.mxu1 %v767_v18 }
 0x156   : > { %995 = vmatmul.mubr.f32.gmra.mrb[54].mxu0 %v780_v31  ;;  %1120 = vmatmul.mubr.f32.gmra.mrb[62].mxu1 %v766_v32  ;;  %v770_v39 = vmax.f32 %v698_v33, 0.0 }
 0x157   : > { %v771_v58 = vmax.f32 %v700_v19, 0.0  ;;  %v703_v35 = vpop.f32.mrb[34].mxu1 }
 0x158   : > { %v704_v40 = vadd.f32 %v703_v35, %v2355_v61  ;;  %v705_v41 = vpop.f32.mrb[35].mxu1 }
 0x159   : > { %v706_v42 = vadd.f32 %v705_v41, %v2358_v0  ;;  %1124 = vmatprep.mubr.f32.mxu1 %v771_v58 }
 0x15a   : > { %1125 = vmatmul.mubr.f32.gmra.mrb[64].mxu1 %v770_v39  ;;  %v774_v45 = vmax.f32 %v704_v40, 0.0 }
 0x15b   : > { %v775_v43 = vmax.f32 %v706_v42, 0.0  ;;  %v709_v44 = vpop.f32.mrb[36].mxu1 }
 0x15c   : > { %v710_v46 = vadd.f32 %v709_v44, %v2355_v61  ;;  %v711_v47 = vpop.f32.mrb[37].mxu1 }
 0x15d   : > { %v712_v49 = vadd.f32 %v711_v47, %v2358_v0  ;;  %1129 = vmatprep.mubr.f32.mxu1 %v775_v43 }
 0x15e   : > { %1130 = vmatmul.mubr.f32.gmra.mrb[66].mxu1 %v774_v45  ;;  %v778_v53 = vmax.f32 %v710_v46, 0.0 }
 0x15f   : > { %v779_v50 = vmax.f32 %v712_v49, 0.0  ;;  %v715_v52 = vpop.f32.mrb[38].mxu1 }
 0x160   : > { %v716_v54 = vadd.f32 %v715_v52, %v2355_v61  ;;  %v717_v55 = vpop.f32.mrb[39].mxu1  ;;  %v1171_v61 = vld [vmem:[%s2550_s5 + $0x50] sm:$0xff] }
 0x161   : > { %v718_v56 = vadd.f32 %v717_v55, %v2358_v0  ;;  %1134 = vmatprep.mubr.f32.mxu1 %v779_v50  ;;  %v1172_v0 = vld [vmem:[%s2550_s5 + $0x58] sm:$0xff] }
 0x162   : > { %1135 = vmatmul.mubr.f32.gmra.mrb[68].mxu1 %v778_v53  ;;  %v782_v57 = vmax.f32 %v716_v54, 0.0  ;;  %v1830_v25 = vpack.c.bf16 %v1172_v0, %v1171_v61 }
 0x163   : > { %v783_v21 = vmax.f32 %v718_v56, 0.0 }
 0x164   : > { %1831 = vmatprep.subr.bf16.mxu0 %v1830_v25 }
 0x165   : > { %1139 = vmatprep.mubr.f32.mxu1 %v783_v21  ;;  %1833 = vmatpush3.bf16.msra.mxu0 %v1830_v25 }
 0x166   : > { %1140 = vmatmul.mubr.f32.gmra.mrb[70].mxu1 %v782_v57  ;;  %1835 = vmatprep.subr.bf16.mxu0 %v1834_v1 }
 0x169   : > { %1837 = vmatpush3.bf16.msra.mxu0 %v1834_v1 }
 0x16a   : > { %1839 = vmatprep.subr.bf16.mxu0 %v1838_v22 }
 0x16d   : > { %1841 = vmatpush3.bf16.msra.mxu0 %v1838_v22 }
 0x1ed   : > { %v1514_v3 = vpop.f32.mrb[24].mxu0 }
 0x1ee   : > { %v1515_v4 = vpop.f32.mrb[25].mxu0 }
 0x1ef   : > { %v1516_v5 = vadd.f32 %v1515_v4, %v1514_v3 }
 0x1f1   : > { %v1517_v6 = vpop.f32.mrb[26].mxu0  ;;  %v922_v17 = vadd.f32 %v1516_v5, %v2451_v13 }
 0x1f2   : > { %v1518_v36 = vpop.f32.mrb[27].mxu0 }
 0x1f3   : > { %v1519_v7 = vadd.f32 %v1518_v36, %v1517_v6 }
 0x1f5   : > { %v1520_v8 = vpop.f32.mrb[28].mxu0  ;;  %v927_v18 = vadd.f32 %v1519_v7, %v2451_v13 }
 0x1f6   : > { %v1521_v9 = vpop.f32.mrb[29].mxu0 }
 0x1f7   : > { %v1522_v10 = vadd.f32 %v1521_v9, %v1520_v8 }
 0x1f9   : > { %v1523_v34 = vpop.f32.mrb[30].mxu0  ;;  %v932_v39 = vadd.f32 %v1522_v10, %v2451_v13 }
 0x1fa   : > { %v1524_v11 = vpop.f32.mrb[31].mxu0 }
 0x1fb   : > { %v1525_v12 = vadd.f32 %v1524_v11, %v1523_v34 }
 0x1fd   : > { %v1594_v14 = vpop.f32.mrb[40].mxu1  ;;  %v1526_v48 = vpop.f32.mrb[32].mxu0  ;;  %v937_v49 = vadd.f32 %v1525_v12, %v2451_v13 }
 0x1fe   : > { %v1595_v15 = vpop.f32.mrb[41].mxu1  ;;  %v1527_v16 = vpop.f32.mrb[33].mxu0 }
 0x1ff   : > { %v1596_v20 = vadd.f32 %v1595_v15, %v1594_v14  ;;  %v1528_v37 = vadd.f32 %v1527_v16, %v1526_v48 }
 0x201   : > { %v1067_v23 = vadd.f32 %v1596_v20, %v922_v17  ;;  %v1597_v24 = vpop.f32.mrb[42].mxu1  ;;  %v1529_v26 = vpop.f32.mrb[34].mxu0  ;;  %v942_v59 = vadd.f32 %v1528_v37, %v2451_v13 }
 0x202   : > { %v1598_v27 = vpop.f32.mrb[43].mxu1  ;;  %v1530_v30 = vpop.f32.mrb[35].mxu0 }
 0x203   : > { %v1145_v29 = vmax.f32 %v1067_v23, 0.0  ;;  %v1599_v31 = vadd.f32 %v1598_v27, %v1597_v24  ;;  %v1531_v32 = vadd.f32 %v1530_v30, %v1529_v26 }
 0x205   : > { %v1072_v33 = vadd.f32 %v1599_v31, %v927_v18  ;;  %v1600_v28 = vpop.f32.mrb[44].mxu1  ;;  %1706 = vmatprep.mubr.f32.mxu0 %v1145_v29  ;;  %v1532_v19 = vpop.f32.mrb[36].mxu0  ;;  %v947_v51 = vadd.f32 %v1531_v32, %v2451_v13 }
 0x206   : > { %v1601_v58 = vpop.f32.mrb[45].mxu1  ;;  %v1533_v35 = vpop.f32.mrb[37].mxu0 }
 0x207   : > { %v1146_v40 = vmax.f32 %v1072_v33, 0.0  ;;  %v1602_v41 = vadd.f32 %v1601_v58, %v1600_v28  ;;  %v1534_v42 = vadd.f32 %v1533_v35, %v1532_v19 }
 0x209   : > { %v1077_v43 = vadd.f32 %v1602_v41, %v932_v39  ;;  %v1603_v44 = vpop.f32.mrb[46].mxu1  ;;  %1707 = vmatmul.mubr.f32.vlgmr.msra.gmra.mrb[56].mxu0 %v1146_v40  ;;  %v1535_v45 = vpop.f32.mrb[38].mxu0  ;;  %v952_v8 = vadd.f32 %v1534_v42, %v2451_v13 }
 0x20a   : > { %v1604_v46 = vpop.f32.mrb[47].mxu1  ;;  %v1536_v47 = vpop.f32.mrb[39].mxu0 }
 0x20b   : > { %v1147_v50 = vmax.f32 %v1077_v43, 0.0  ;;  %v1605_v52 = vadd.f32 %v1604_v46, %v1603_v44  ;;  %v1537_v53 = vadd.f32 %v1536_v47, %v1535_v45 }
 0x20d   : > { %v1082_v54 = vadd.f32 %v1605_v52, %v937_v49  ;;  %v1606_v55 = vpop.f32.mrb[48].mxu1  ;;  %1709 = vmatprep.mubr.f32.mxu0 %v1147_v50  ;;  %v1538_v56 = vpop.f32.mrb[40].mxu0  ;;  %v957_v16 = vadd.f32 %v1537_v53, %v2451_v13 }
 0x20e   : > { %v1607_v21 = vpop.f32.mrb[49].mxu1  ;;  %v1539_v57 = vpop.f32.mrb[41].mxu0 }
 0x20f   : > { %v1148_v60 = vmax.f32 %v1082_v54, 0.0  ;;  %v1608_v62 = vadd.f32 %v1607_v21, %v1606_v55  ;;  %v1540_v61 = vadd.f32 %v1539_v57, %v1538_v56 }
 0x211   : > { %v1087_v0 = vadd.f32 %v1608_v62, %v942_v59  ;;  %v1609_v25 = vpop.f32.mrb[50].mxu1  ;;  %1710 = vmatmul.mubr.f32.gmra.mrb[58].mxu0 %v1148_v60  ;;  %v1541_v63 = vpop.f32.mrb[42].mxu0  ;;  %v962_v18 = vadd.f32 %v1540_v61, %v2451_v13 }
 0x212   : > { %v1610_v38 = vpop.f32.mrb[51].mxu1  ;;  %v1542_v1 = vpop.f32.mrb[43].mxu0 }
 0x213   : > { %v1149_v2 = vmax.f32 %v1087_v0, 0.0  ;;  %v1611_v22 = vadd.f32 %v1610_v38, %v1609_v25  ;;  %v1543_v3 = vadd.f32 %v1542_v1, %v1541_v63 }
 0x215   : > { %v1092_v4 = vadd.f32 %v1611_v22, %v947_v51  ;;  %v1612_v5 = vpop.f32.mrb[52].mxu1  ;;  %1712 = vmatprep.mubr.f32.mxu0 %v1149_v2  ;;  %v1544_v6 = vpop.f32.mrb[44].mxu0  ;;  %v967_v39 = vadd.f32 %v1543_v3, %v2451_v13 }
 0x216   : > { %v1613_v36 = vpop.f32.mrb[53].mxu1  ;;  %v1545_v7 = vpop.f32.mrb[45].mxu0 }
 0x217   : > { %v1150_v9 = vmax.f32 %v1092_v4, 0.0  ;;  %v1614_v10 = vadd.f32 %v1613_v36, %v1612_v5  ;;  %v1546_v34 = vadd.f32 %v1545_v7, %v1544_v6 }
 0x219   : > { %v1097_v11 = vadd.f32 %v1614_v10, %v952_v8  ;;  %v1615_v12 = vpop.f32.mrb[54].mxu1  ;;  %1713 = vmatmul.mubr.f32.gmra.mrb[60].mxu0 %v1150_v9  ;;  %v1547_v14 = vpop.f32.mrb[46].mxu0  ;;  %v972_v49 = vadd.f32 %v1546_v34, %v2451_v13 }
 0x21a   : > { %v1616_v48 = vpop.f32.mrb[55].mxu1  ;;  %v1548_v15 = vpop.f32.mrb[47].mxu0 }
 0x21b   : > { %v1151_v17 = vmax.f32 %v1097_v11, 0.0  ;;  %v1617_v20 = vadd.f32 %v1616_v48, %v1615_v12  ;;  %v1549_v37 = vadd.f32 %v1548_v15, %v1547_v14 }
 0x21d   : > { %v1102_v23 = vadd.f32 %v1617_v20, %v957_v16  ;;  %v1550_v24 = vpop.f32.mrb[48].mxu0  ;;  %v1618_v26 = vpop.f32.mrb[56].mxu1  ;;  %1715 = vmatprep.mubr.f32.mxu0 %v1151_v17  ;;  %v977_v59 = vadd.f32 %v1549_v37, %v2451_v13  ;;  %v1475_v37 = vld [vmem:[%s2551_s6] ss:$0 sm:$0xff] }
 0x21e   : > { %v1551_v27 = vpop.f32.mrb[49].mxu0  ;;  %v1619_v30 = vpop.f32.mrb[57].mxu1 }
 0x21f   : > { %v1152_v29 = vmax.f32 %v1102_v23, 0.0  ;;  %v1552_v31 = vadd.f32 %v1551_v27, %v1550_v24  ;;  %v1620_v32 = vadd.f32 %v1619_v30, %v1618_v26 }
 0x221   : > { %v1107_v33 = vadd.f32 %v1620_v32, %v962_v18  ;;  %v1553_v28 = vpop.f32.mrb[50].mxu0  ;;  %v1621_v19 = vpop.f32.mrb[58].mxu1  ;;  %1716 = vmatmul.mubr.f32.gmra.mrb[62].mxu0 %v1152_v29  ;;  %v982_v38 = vadd.f32 %v1552_v31, %v2451_v13 }
 0x222   : > { %v1554_v58 = vpop.f32.mrb[51].mxu0  ;;  %v1622_v35 = vpop.f32.mrb[59].mxu1 }
 0x223   : > { %v1153_v40 = vmax.f32 %v1107_v33, 0.0  ;;  %v1555_v41 = vadd.f32 %v1554_v58, %v1553_v28  ;;  %v1623_v42 = vadd.f32 %v1622_v35, %v1621_v19 }
 0x225   : > { %v1112_v43 = vadd.f32 %v1623_v42, %v967_v39  ;;  %v1556_v44 = vpop.f32.mrb[52].mxu0  ;;  %v1624_v45 = vpop.f32.mrb[60].mxu1  ;;  %1718 = vmatprep.mubr.f32.mxu0 %v1153_v40  ;;  %v987_v4 = vadd.f32 %v1555_v41, %v2451_v13 }
 0x226   : > { %v1557_v46 = vpop.f32.mrb[53].mxu0  ;;  %v1625_v47 = vpop.f32.mrb[61].mxu1 }
 0x227   : > { %v1154_v50 = vmax.f32 %v1112_v43, 0.0  ;;  %v1558_v52 = vadd.f32 %v1557_v46, %v1556_v44  ;;  %v1626_v53 = vadd.f32 %v1625_v47, %v1624_v45 }
 0x229   : > { %v1117_v54 = vadd.f32 %v1626_v53, %v972_v49  ;;  %v1559_v55 = vpop.f32.mrb[54].mxu0  ;;  %v1627_v56 = vpop.f32.mrb[62].mxu1  ;;  %1719 = vmatmul.mubr.f32.gmra.mrb[64].mxu0 %v1154_v50  ;;  %v992_v9 = vadd.f32 %v1558_v52, %v2451_v13 }
 0x22a   : > { %v1560_v21 = vpop.f32.mrb[55].mxu0  ;;  %v1628_v57 = vpop.f32.mrb[63].mxu1 }
 0x22b   : > { %v1155_v60 = vmax.f32 %v1117_v54, 0.0  ;;  %v1561_v62 = vadd.f32 %v1560_v21, %v1559_v55  ;;  %v1629_v61 = vadd.f32 %v1628_v57, %v1627_v56 }
 0x22d   : > { %v1122_v0 = vadd.f32 %v1629_v61, %v977_v59  ;;  %v1630_v25 = vpop.f32.mrb[64].mxu1  ;;  %1721 = vmatprep.mubr.f32.mxu0 %v1155_v60  ;;  %v997_v48 = vadd.f32 %v1561_v62, %v2451_v13 }
 0x22e   : > { %v1631_v63 = vpop.f32.mrb[65].mxu1 }
 0x22f   : > { %v1156_v1 = vmax.f32 %v1122_v0, 0.0  ;;  %v1632_v51 = vadd.f32 %v1631_v63, %v1630_v25 }
 0x231   : > { %v1127_v2 = vadd.f32 %v1632_v51, %v982_v38  ;;  %v1633_v22 = vpop.f32.mrb[66].mxu1  ;;  %1722 = vmatmul.mubr.f32.gmra.mrb[66].mxu0 %v1156_v1 }
 0x232   : > { %v1634_v3 = vpop.f32.mrb[67].mxu1 }
 0x233   : > { %v1157_v5 = vmax.f32 %v1127_v2, 0.0  ;;  %v1635_v6 = vadd.f32 %v1634_v3, %v1633_v22 }
 0x235   : > { %v1132_v36 = vadd.f32 %v1635_v6, %v987_v4  ;;  %v1636_v7 = vpop.f32.mrb[68].mxu1  ;;  %1724 = vmatprep.mubr.f32.mxu0 %v1157_v5 }
 0x236   : > { %v1637_v8 = vpop.f32.mrb[69].mxu1 }
 0x237   : > { %v1158_v10 = vmax.f32 %v1132_v36, 0.0  ;;  %v1638_v34 = vadd.f32 %v1637_v8, %v1636_v7 }
 0x239   : > { %v1137_v11 = vadd.f32 %v1638_v34, %v992_v9  ;;  %v1639_v12 = vpop.f32.mrb[70].mxu1  ;;  %1725 = vmatmul.mubr.f32.gmra.mrb[68].mxu0 %v1158_v10 }
 0x23a   : > { %v1640_v14 = vpop.f32.mrb[71].mxu1 }
 0x23b   : > { %v1159_v15 = vmax.f32 %v1137_v11, 0.0  ;;  %v1641_v16 = vadd.f32 %v1640_v14, %v1639_v12 }
 0x23d   : > { %v1142_v17 = vadd.f32 %v1641_v16, %v997_v48  ;;  %1727 = vmatprep.mubr.f32.mxu0 %v1159_v15 }
 0x23f   : > { %v1160_v20 = vmax.f32 %v1142_v17, 0.0 }
 0x241   : > { %1728 = vmatmul.mubr.f32.gmra.mrb[70].mxu0 %v1160_v20 }
 0x2dc   : > { %v1708_v23 = vpop.f32.mrb[56].mxu0 }
 0x2dd   : > { %v1256_v24 = vadd.f32 %v1708_v23, %v1475_v37  ;;  %v1250_v26 = vpop.f32.mrb[57].mxu0 }
 0x2de   : > { %v1251_v27 = vadd.f32 %v1475_v37, %v1250_v26 }
 0x2df   : > { %1330 = vst [vmem:[%s2475_s23 + $0x8] sm:$0xff] %v1256_v24 }
 0x2e0   : > { %1329 = vst [vmem:[%s2475_s23] sm:$0xff] %v1251_v27 }
 0x2e4   : > { %v1711_v13 = vpop.f32.mrb[58].mxu0 }
 0x2e5   : > { %v1266_v30 = vadd.f32 %v1711_v13, %v1475_v37  ;;  %v1260_v18 = vpop.f32.mrb[59].mxu0 }
 0x2e6   : > { %v1261_v29 = vadd.f32 %v1475_v37, %v1260_v18 }
 0x2e7   : > { %1332 = vst [vmem:[%s2475_s23 + $0x18] sm:$0xff] %v1266_v30 }
 0x2e8   : > { %1331 = vst [vmem:[%s2475_s23 + $0x10] sm:$0xff] %v1261_v29 }
 0x2ec   : > { %v1714_v31 = vpop.f32.mrb[60].mxu0 }
 0x2ed   : > { %v1276_v32 = vadd.f32 %v1714_v31, %v1475_v37  ;;  %v1270_v33 = vpop.f32.mrb[61].mxu0 }
 0x2ee   : > { %v1271_v28 = vadd.f32 %v1475_v37, %v1270_v33 }
 0x2ef   : > { %1334 = vst [vmem:[%s2475_s23 + $0x28] sm:$0xff] %v1276_v32 }
 0x2f0   : > { %1333 = vst [vmem:[%s2475_s23 + $0x20] sm:$0xff] %v1271_v28 }
 0x2f4   : > { %v1717_v19 = vpop.f32.mrb[62].mxu0 }
 0x2f5   : > { %v1286_v58 = vadd.f32 %v1717_v19, %v1475_v37  ;;  %v1280_v35 = vpop.f32.mrb[63].mxu0 }
 0x2f6   : > { %v1281_v39 = vadd.f32 %v1475_v37, %v1280_v35 }
 0x2f7   : > { %1336 = vst [vmem:[%s2475_s23 + $0x38] sm:$0xff] %v1286_v58 }
 0x2f8   : > { %1335 = vst [vmem:[%s2475_s23 + $0x30] sm:$0xff] %v1281_v39 }
 0x2fc   : > { %v1720_v40 = vpop.f32.mrb[64].mxu0 }
 0x2fd   : > { %v1296_v41 = vadd.f32 %v1720_v40, %v1475_v37  ;;  %v1290_v42 = vpop.f32.mrb[65].mxu0 }
 0x2fe   : > { %v1291_v43 = vadd.f32 %v1475_v37, %v1290_v42 }
 0x2ff   : > { %1338 = vst [vmem:[%s2475_s23 + $0x48] sm:$0xff] %v1296_v41 }
 0x300   : > { %1337 = vst [vmem:[%s2475_s23 + $0x40] sm:$0xff] %v1291_v43 }
 0x304   : > { %v1723_v44 = vpop.f32.mrb[66].mxu0 }
 0x305   : > { %v1306_v45 = vadd.f32 %v1723_v44, %v1475_v37  ;;  %v1300_v46 = vpop.f32.mrb[67].mxu0 }
 0x306   : > { %v1301_v47 = vadd.f32 %v1475_v37, %v1300_v46 }
 0x307   : > { %1340 = vst [vmem:[%s2475_s23 + $0x58] sm:$0xff] %v1306_v45 }
 0x308   : > { %1339 = vst [vmem:[%s2475_s23 + $0x50] sm:$0xff] %v1301_v47 }
 0x30c   : > { %v1726_v49 = vpop.f32.mrb[68].mxu0 }
 0x30d   : > { %v1316_v50 = vadd.f32 %v1726_v49, %v1475_v37  ;;  %v1310_v52 = vpop.f32.mrb[69].mxu0 }
 0x30e   : > { %v1311_v53 = vadd.f32 %v1475_v37, %v1310_v52 }
 0x30f   : > { %1342 = vst [vmem:[%s2475_s23 + $0x68] sm:$0xff] %v1316_v50 }
 0x310   : > { %1341 = vst [vmem:[%s2475_s23 + $0x60] sm:$0xff] %v1311_v53 }
 0x314   : > { %v1729_v54 = vpop.f32.mrb[70].mxu0 }
 0x315   : > { %v1326_v55 = vadd.f32 %v1729_v54, %v1475_v37  ;;  %v1320_v56 = vpop.f32.mrb[71].mxu0 }
 0x316   : > { %v1321_v21 = vadd.f32 %v1475_v37, %v1320_v56 }
 0x317   : > { %1344 = vst [vmem:[%s2475_s23 + $0x78] sm:$0xff] %v1326_v55 }
 0x318   : > { %1343 = vst [vmem:[%s2475_s23 + $0x70] sm:$0xff] %v1321_v21 }
 0x319   : > { %1942 = shalt.err (!%p1939_p7)
}
 0x31a   : > { %s1943_s20 = scalar_lea.hbm %s2496_s14, 2048  ;;  %s1947_s22 = scalar_lea.hbm %s2552_s7, 4096 }
 0x31b   : > { %p1944_p8 = scmp.ne.s32.totalorder %s2496_s14, %s1943_s20  ;;  %p1948_p1 = scmp.lt.u32.totalorder %s2496_s14, %s2552_s7 }
 0x31c   : > { %p1949_p0 = scmp.lt.u32.totalorder %s1947_s22, %s1943_s20  ;;  %p1951_p6 = scmp.lt.u32.totalorder %s1943_s20, %s2496_s14 }
 0x31d   : > { %p1945_p11 = pnand %p1944_p8, %p2563_p9 }
 0x31e   : > { %p1950_p5 = por %p1949_p0, %p1948_p1 }
 0x31f   : > { %p1946_p13 = pneg %p1945_p11 }
 0x320   : > { %p1952_p10 = por %p1951_p6, %p1950_p5 }
 0x322   : > { %p1953_p12 = pnand %p1952_p10, %p1946_p13 }
 0x324   : > { %1956 = shalt.err (!%p1953_p12)
}
 0x325   : > { %s2002_s9 = smov 128   ;;  %s2003_s18 = smov 8  }
 0x326   : > { %1850 = dma.vmem_to_hbm [thread:$0]  (%p2563_p9), %s2498_s8, 2048, %s2496_s14, %s2504_s17, %s2002_s9, %s2002_s9, %s2003_s18  }
 0x327 PF: > { %p1862_p2 = scmp.ge.s32.totalorder %s1995_s27, 2  ;;  %s1374_s28 = sand.u32 1, %s1983_s24  }
 0x328   : > { %p2564_p3 = scmp.ne.s32.totalorder %s2557_s12, 0  ;;  %s1375_s16 = scalar_lea.sflag [#allocation4], %s1374_s28 }
 0x32a   : > { %p1857_p4 = pnand %p1862_p2, %p2564_p3 }
 0x32c   : > { %1978 = dma.done.wait (!%p1857_p4), %s1375_s16, 2048  }
 0x32d   : > { %1980 = vsyncadd (!%p1857_p4), %s1375_s16, 4294965248  ;;  %p18_p7 = scmp.ge.s32.totalorder %s2069_s30, 4   ;;  %s2565_s24 = smov %s1987_s25 }
 0x32e   : > { %s2566_s25 = smov %s1991_s26  ;;  %s2567_s26 = smov %s2080_s10 }
 0x32f   : > { %s2568_s27 = smov %s2069_s30  ;;  %20 = sbr.rel (!%p18_p7) target bundleno = 4 (0x4), region = 88 }
 0x336   :  { %1380 = vsyncpa [#allocation3], 1 }
 0x337   :  { %1382 = vsyncpa [#allocation3 + $0x1], 1 }
 0x338   :  { %1383 = vsyncpa [#allocation4], 1 }
 0x339   :  { %1385 = vsyncpa [#allocation4 + $0x1], 1 }

// kernel: tpu_custom_call.1
= control target key start
LH: loop header
LB: loop body
LE: loop exit
PB: predicated region body
PF: predicated region fallthrough
CT: control target
= control target key end

     0   :  { %12 = vsyncpa [#allocation3], 0  ;;  %s2545_s0 = inlined_call_operand.vmem [shape: f32[256,32], index: 0, kind: input, shape index: {}]   ;;  %s2546_s1 = inlined_call_operand.vmem [shape: f32[32,512], index: 1, kind: input, shape index: {}]   ;;  %s2547_s2 = inlined_call_operand.vmem [shape: f32[1,512], index: 2, kind: input, shape index: {}]   ;;  %s2548_s3 = inlined_call_operand.hbm [shape: f32[512,128], index: 3, kind: input, shape index: {}]   ;;  %s2549_s4 = inlined_call_operand.vmem [shape: f32[1,128], index: 4, kind: input, shape index: {}]   ;;  %s2550_s5 = inlined_call_operand.vmem [shape: f32[128,128], index: 5, kind: input, shape index: {}]   ;;  %s2551_s6 = inlined_call_operand.vmem [shape: f32[1,128], index: 6, kind: input, shape index: {}]   ;;  %s2552_s7 = inlined_call_operand.hbm [shape: f32[256,128], index: 7, kind: output, shape index: {}]  }
   0x1   :  { %13 = vsyncpa [#allocation4], 0 }
   0x2   :  { %15 = vsyncpa [#allocation4 + $0x1], 0  ;;  %s2044_s24 = smov 0   ;;  %s2046_s25 = smov 0  }
   0x3   :  { %s2048_s26 = smov 0   ;;  %s2050_s27 = smov 0  }
   0x4 LB: > { %s2065_s28 = sadd.s32 4294967295, %s1995_s27   ;;  %s1433_s29 = sadd.s32 4294967294, %s1995_s27   ;;  %s1995_s27 = sphi %s2050_s27, %s2568_s27   ;;  %s1991_s26 = sphi %s2048_s26, %s2567_s26   ;;  %s1987_s25 = sphi %s2046_s25, %s2566_s25   ;;  %s1983_s24 = sphi %s2044_s24, %s2565_s24  }
   0x5   : > { %s2069_s30 = sadd.s32 1, %s1995_s27   ;;  %s180_s8 = sadd.s32 1, %s1991_s26 }
   0x6   : > { %s177_s9 = ssub.s32 %s1995_s27, %s2069_s30  ;;  %p190_p0 = scmp.ne.s32.totalorder %s1991_s26, %s1987_s25 }
   0x7   : > { %p178_p1 = scmp.eq.s32.totalorder %s177_s9, 0  ;;  %p191_p2 = scmp.eq.s32.totalorder %s2065_s28, 1 }
   0x8   : > { %p196_p3 = scmp.ne.s32.totalorder %s1987_s25, %s1983_s24  ;;  %p197_p4 = scmp.eq.s32.totalorder %s1433_s29, 1 }
   0x9   : > { %s2080_s10 = scalar_select %p178_p1, %s1991_s26, %s180_s8  }
   0xa   : > { %p2082_p5 = por %p191_p2, %p190_p0  ;;  %p2086_p6 = por %p197_p4, %p196_p3 }
   0xb   : > { %p1434_p7 = scmp.ge.s32.totalorder %s1995_s27, 1  ;;  %p204_p8 = scmp.lt.s32.totalorder %s1995_s27, 3 }
   0xc   : > { %s2556_s11 = scalar_select %p2082_p5, 1, 0 }
   0xd   : > { %s2557_s12 = scalar_select %p2086_p6, 1, 0 }
   0xe   : > { %p2553_p9 = scmp.eq.s32.totalorder %s2065_s28, 0  ;;  %p2093_p10 = pnand %p1434_p7, %p204_p8 }
   0xf   : > { %s1997_s14 = smov [#allocation2]   ;;  %s1901_s19 = scalar_lea.hbm %s2548_s3, 8192 }
  0x10   : > { %s2558_s13 = scalar_select %p2093_p10, 1, 0 }
  0x11   : > { %s222_s15 = sshll.u32 %s1997_s14, 4  ;;  %p1852_p11 = pneg %p2093_p10  ;;  %s223_s15 = int_to_ptr.vmem [resolvable:$true] %s222_s15 }
  0x12   : > { %p1902_p13 = scmp.ne.s32.totalorder %s2548_s3, %s1901_s19  ;;  %p1908_p3 = scmp.lt.u32.totalorder %s1901_s19, %s2548_s3 }
  0x13   : > { %p2101_p12 = pnand %p2553_p9, %p1852_p11 }
  0x15   : > { %p1903_p0 = pneg %p2101_p12 }
  0x17   : > { %p1904_p1 = pnand %p1903_p0, %p1902_p13 }
  0x19   : > { %p1905_p2 = pneg %p1904_p1 }
  0x1b   : > { %p1910_p4 = pnand %p1908_p3, %p1905_p2 }
  0x1d   : > { %1913 = shalt.err (!%p1910_p4)
}
  0x1e   : > { %s1914_s29 = scalar_lea.vmem %s223_s15, 8192  ;;  %p1922_p9 = scmp.lt.s32.totalorder %s223_s15, %s223_s15 }
  0x1f   : > { %p1915_p7 = scmp.ne.s32.totalorder %s223_s15, %s1914_s29  ;;  %p1923_p6 = scmp.lt.s32.totalorder %s1914_s29, %s1914_s29 }
  0x21   : > { %p1917_p8 = pnand %p1915_p7, %p1903_p0  ;;  %p1924_p5 = por %p1923_p6, %p1922_p9 }
  0x23   : > { %p1918_p11 = pneg %p1917_p8 }
  0x25   : > { %p1925_p10 = pnand %p1924_p5, %p1918_p11 }
  0x27   : > { %1928 = shalt.err (!%p1925_p10)
}
  0x28   : > { %s1998_s8 = smov 128   ;;  %s1999_s9 = smov 8  }
  0x29   : > { %1855 = dma.hbm_to_vmem [thread:$0]  (!%p2101_p12), %s2548_s3, 8192, %s223_s15, [#allocation3], %s1998_s8, %s1998_s8, %s1999_s9  }
  0x2a   : > { %p2560_p13 = scmp.ne.s32.totalorder %s2558_s13, 0 }
  0x2b   : > { %p2561_p1 = scmp.eq.s32.totalorder (!%p2560_p13), %s2065_s28, 0 }
  0x2c   : > { %256 = sbr.rel (%p2560_p13) target bundleno = 807 (0x327), region = 48 }
  0x33   : > { %1974 = dma.done.wait (%p2561_p1), [#allocation3], 8192   ;;  %p2562_p0 = pmov %p2561_p1 }
  0x34   : > { %s1440_s18 = sshll.u32 %s2065_s28, 4  ;;  %v2000_v0 = vmov 0.0   ;;  %v312_v1 = vld [vmem:[%s2546_s1 + $0x8] sm:$0xff]  ;;  %v311_v3 = vld [vmem:[%s2546_s1] sm:$0xff]  ;;  %v314_v12 = vld [vmem:[%s2546_s1 + $0x18] sm:$0xff]  ;;  %vm349_vm0 = vcmask 261120  }
  0x35   : > { %1976 = vsyncadd (%p2562_p0), [#allocation3], 4294959104  ;;  %462 = vmatprep.mubr.f32.mxu0 %v2000_v0  ;;  %534 = vmatprep.mubr.f32.mxu1 %v2000_v0  ;;  %p289_p5 = scmp.lt.s32.totalorder %s1440_s18, 31  ;;  %v316_v2 = vld [vmem:[%s2546_s1 + $0x28] sm:$0xff]  ;;  %v315_v5 = vld [vmem:[%s2546_s1 + $0x20] sm:$0xff]  ;;  %s285_s20 = sand.u32 1, %s1987_s25  }
  0x36   : > { %v1730_v4 = vpack.c.bf16 %v316_v2, %v312_v1  ;;  %v320_v6 = vld [vmem:[%s2546_s1 + $0x48] sm:$0xff]  ;;  %v1732_v8 = vpack.c.bf16 %v315_v5, %v311_v3  ;;  %v319_v10 = vld [vmem:[%s2546_s1 + $0x40] sm:$0xff]  ;;  %v318_v13 = vld [vmem:[%s2546_s1 + $0x38] sm:$0xff]  ;;  %s1439_s21 = sshll.u32 %s285_s20, 7  ;;  %s1481_s29 = sshll.u32 %s2065_s28, 11 }
  0x37   : > { %s2570_s18 = smov (!%p289_p5, %s1440_s18), 31  ;;  %v324_v7 = vld [vmem:[%s2546_s1 + $0x68] sm:$0xff]  ;;  %v323_v11 = vld [vmem:[%s2546_s1 + $0x60] sm:$0xff]  ;;  %v1738_v15 = vpack.c.bf16 %v318_v13, %v314_v12  ;;  %v313_v16 = vld [vmem:[%s2546_s1 + $0x10] sm:$0xff]  ;;  %s2475_s23 = scalar_lea.vmem [#allocation5], %s1439_s21 }
  0x38   : > { %v1734_v9 = vpack.c.bf16 %v324_v7, %v320_v6  ;;  %s1441_s19 = sshll.u32 %s2570_s18, 3  ;;  %1731 = vmatprep.subr.bf16.mxu0 %v1730_v4  ;;  %1842 = vmatprep.subr.bf16.mxu1 %v1730_v4  ;;  %v1736_v14 = vpack.c.bf16 %v323_v11, %v319_v10  ;;  %v317_v17 = vld [vmem:[%s2546_s1 + $0x30] sm:$0xff]  ;;  %v322_v18 = vld [vmem:[%s2546_s1 + $0x58] sm:$0xff]  ;;  %v832_v26 = vld [vmem:[#allocation2 + $0x180] sm:$0xff]  ;;  %s1359_s8 = sshll.u32 %s2475_s23, 4  ;;  %s2498_s8 = int_to_ptr.vmem [resolvable:$true] %s1359_s8 }
  0x39   : > { %1733 = vmatpush1.bf16.msra.mxu0 %v1732_v8  ;;  %1844 = vmatpush1.bf16.msra.mxu1 %v1732_v8  ;;  %s2163_s9 = scalar_lea.vmem %s2545_s0, %s1441_s19  ;;  %v326_v19 = vld [vmem:[%s2546_s1 + $0x78] sm:$0xff]  ;;  %v1740_v22 = vpack.c.bf16 %v317_v17, %v313_v16  ;;  %v321_v24 = vld [vmem:[%s2546_s1 + $0x50] sm:$0xff]  ;;  %v833_v27 = vld [vmem:[#allocation2 + $0x188] sm:$0xff]  ;;  %s2496_s14 = scalar_lea.hbm %s2552_s7, %s1481_s29 }
  0x3a   : > { %1735 = vmatprep.subr.bf16.mxu0 %v1734_v9  ;;  %1843 = vmatprep.subr.bf16.mxu1 %v1734_v9  ;;  %v2178_v20 = vld [vmem:[%s2163_s9] sm:$0xff]  ;;  %v1742_v23 = vpack.c.bf16 %v326_v19, %v322_v18  ;;  %v325_v25 = vld [vmem:[%s2546_s1 + $0x70] sm:$0xff]  ;;  %v2195_v28 = vld [vmem:[%s2163_s9 + $0x8] sm:$0xff]  ;;  %v1778_v33 = vpack.c.bf16 %v833_v27, %v832_v26  ;;  %s2504_s17 = scalar_lea.sflag [#allocation4], %s285_s20  ;;  %s1929_s28 = scalar_lea.vmem %s2498_s8, 2048 }
  0x3b   : > { %v2181_v21 = vld [vmem:[%s2163_s9 + $0x60] sm:$0xff]  ;;  %v2198_v29 = vld [vmem:[%s2163_s9 + $0x68] sm:$0xff]  ;;  %v1744_v30 = vpack.c.bf16 %v325_v25, %v321_v24  ;;  %v2206_v37 = vld [vmem:[%s2163_s9 + $0x10] sm:$0xff]  ;;  %p1930_p6 = scmp.ne.s32.totalorder %s2498_s8, %s1929_s28  ;;  %p2563_p9 = scmp.ne.s32.totalorder %s2556_s11, 0 }
  0x3c   : > { %v800_v31 = vld [vmem:[#allocation2 + $0x80] sm:$0xff]  ;;  %v801_v32 = vld [vmem:[#allocation2 + $0x88] sm:$0xff]  ;;  %v2209_v38 = vld [vmem:[%s2163_s9 + $0x70] sm:$0xff]  ;;  %s2001_s16 = smov [#allocation5]  }
  0x3d   : > { %1737 = vmatpush1.bf16.msra.mxu0 %v1736_v14  ;;  %1845 = vmatpush1.bf16.msra.mxu1 %v1736_v14  ;;  %v1746_v34 = vpack.c.bf16 %v801_v32, %v800_v31  ;;  %v784_v35 = vld [vmem:[#allocation2] sm:$0xff]  ;;  %v785_v36 = vld [vmem:[#allocation2 + $0x8] sm:$0xff]  ;;  %v802_v40 = vld [vmem:[#allocation2 + $0x90] sm:$0xff]  ;;  %p1931_p10 = pnand %p1930_p6, %p2563_p9  ;;  %s1933_s15 = sshll.u32 %s2001_s16, 4  ;;  %s1934_s15 = int_to_ptr.vmem [resolvable:$false] %s1933_s15 }
  0x3e   : > { %1739 = vmatprep.subr.bf16.mxu1 %v1738_v15  ;;  %v1748_v39 = vpack.c.bf16 %v785_v36, %v784_v35  ;;  %v803_v41 = vld [vmem:[#allocation2 + $0x98] sm:$0xff]  ;;  %v786_v42 = vld [vmem:[#allocation2 + $0x10] sm:$0xff]  ;;  %v804_v46 = vld [vmem:[#allocation2 + $0xa0] sm:$0xff]  ;;  %s1935_s13 = scalar_lea.vmem %s1934_s15, 4096  ;;  %p1936_p2 = scmp.lt.s32.totalorder %s2498_s8, %s1934_s15 }
  0x3f   : > { %1747 = vmatprep.subr.bf16.mxu0 %v1746_v34  ;;  %v1750_v43 = vpack.c.bf16 %v803_v41, %v802_v40  ;;  %v787_v44 = vld [vmem:[#allocation2 + $0x18] sm:$0xff]  ;;  %v805_v47 = vld [vmem:[#allocation2 + $0xa8] sm:$0xff]  ;;  %v788_v48 = vld [vmem:[#allocation2 + $0x20] sm:$0xff]  ;;  %p1932_p12 = pneg %p1931_p10  ;;  %p1937_p3 = scmp.lt.s32.totalorder %s1935_s13, %s1929_s28 }
  0x40   : > { %1442 = vmatmul.mubr.msk.f32.vlgmr.msra.gmra.mrb[0].mxu0 %vm349_vm0, %v2178_v20  ;;  %1454 = vmatmul.mubr.msk.f32.vlgmr.msra.gmra.mrb[0].mxu1 %vm349_vm0, %v2181_v21  ;;  %v1752_v45 = vpack.c.bf16 %v787_v44, %v786_v42  ;;  %v789_v49 = vld [vmem:[#allocation2 + $0x28] sm:$0xff]  ;;  %v2220_v50 = vld [vmem:[%s2163_s9 + $0x18] sm:$0xff]  ;;  %v816_v52 = vld [vmem:[#allocation2 + $0x100] sm:$0xff]  ;;  %v1754_v54 = vpack.c.bf16 %v805_v47, %v804_v46 }
  0x41   : > { %1741 = vmatpush1.bf16.msra.mxu1 %v1740_v22  ;;  %468 = vmatprep.mubr.f32.mxu0 %v2000_v0  ;;  %v2223_v51 = vld [vmem:[%s2163_s9 + $0x78] sm:$0xff]  ;;  %v817_v53 = vld [vmem:[#allocation2 + $0x108] sm:$0xff]  ;;  %v834_v55 = vld [vmem:[#allocation2 + $0x190] sm:$0xff]  ;;  %v1756_v56 = vpack.c.bf16 %v789_v49, %v788_v48  ;;  %p1938_p4 = por %p1937_p3, %p1936_p2 }
  0x42   : > { %540 = vmatprep.mubr.f32.mxu1 %v2000_v0  ;;  %1743 = vmatprep.subr.bf16.mxu1 %v1742_v23  ;;  %v806_v57 = vld [vmem:[#allocation2 + $0xb0] sm:$0xff]  ;;  %v807_v58 = vld [vmem:[#allocation2 + $0xb8] sm:$0xff]  ;;  %v2232_v62 = vld [vmem:[%s2163_s9 + $0x20] sm:$0xff]  ;;  %v1780_v63 = vpack.c.bf16 %v817_v53, %v816_v52 }
  0x43   : > { %1749 = vmatpush3.bf16.msra.mxu0 %v1748_v39  ;;  %v835_v59 = vld [vmem:[#allocation2 + $0x198] sm:$0xff]  ;;  %v790_v60 = vld [vmem:[#allocation2 + $0x30] sm:$0xff]  ;;  %v1758_v3 = vpack.c.bf16 %v807_v58, %v806_v57  ;;  %v836_v5 = vld [vmem:[#allocation2 + $0x1a0] sm:$0xff]  ;;  %p1939_p7 = pnand %p1938_p4, %p1932_p12 }
  0x44   : > { %1443 = vmatmul.mubr.msk.f32.gmra.mrb[2].mxu0 %vm349_vm0, %v2195_v28  ;;  %1455 = vmatmul.mubr.msk.f32.gmra.mrb[2].mxu1 %vm349_vm0, %v2198_v29  ;;  %v791_v61 = vld [vmem:[#allocation2 + $0x38] sm:$0xff]  ;;  %v818_v1 = vld [vmem:[#allocation2 + $0x110] sm:$0xff]  ;;  %v1782_v4 = vpack.c.bf16 %v835_v59, %v834_v55  ;;  %v808_v7 = vld [vmem:[#allocation2 + $0xc0] sm:$0xff] }
  0x45   : > { %474 = vmatprep.mubr.f32.mxu0 %v2000_v0  ;;  %546 = vmatprep.mubr.f32.mxu1 %v2000_v0  ;;  %v819_v2 = vld [vmem:[#allocation2 + $0x118] sm:$0xff]  ;;  %v1760_v6 = vpack.c.bf16 %v791_v61, %v790_v60  ;;  %v809_v8 = vld [vmem:[#allocation2 + $0xc8] sm:$0xff]  ;;  %v792_v10 = vld [vmem:[#allocation2 + $0x40] sm:$0xff] }
  0x46   : > { %1745 = vmatpush1.bf16.msra.mxu1 %v1744_v30  ;;  %1751 = vmatprep.subr.bf16.mxu0 %v1750_v43  ;;  %v837_v9 = vld [vmem:[#allocation2 + $0x1a8] sm:$0xff]  ;;  %v1784_v13 = vpack.c.bf16 %v819_v2, %v818_v1  ;;  %v820_v14 = vld [vmem:[#allocation2 + $0x120] sm:$0xff]  ;;  %v1762_v16 = vpack.c.bf16 %v809_v8, %v808_v7  ;;  %v838_v18 = vld [vmem:[#allocation2 + $0x1b0] sm:$0xff] }
  0x47   : > { %1779 = vmatprep.subr.bf16.mxu1 %v1778_v33  ;;  %1753 = vmatpush3.bf16.msra.mxu0 %v1752_v45  ;;  %v793_v11 = vld [vmem:[#allocation2 + $0x48] sm:$0xff]  ;;  %v1786_v17 = vpack.c.bf16 %v837_v9, %v836_v5  ;;  %v811_v22 = vld [vmem:[#allocation2 + $0xd8] sm:$0xff]  ;;  %v794_v24 = vld [vmem:[#allocation2 + $0x50] sm:$0xff] }
  0x48   : > { %1444 = vmatmul.mubr.msk.f32.gmra.mrb[4].mxu0 %vm349_vm0, %v2206_v37  ;;  %1456 = vmatmul.mubr.msk.f32.gmra.mrb[4].mxu1 %vm349_vm0, %v2209_v38  ;;  %v2241_v12 = vld [vmem:[%s2163_s9 + $0x28] sm:$0xff]  ;;  %v1764_v19 = vpack.c.bf16 %v793_v11, %v792_v10  ;;  %v839_v23 = vld [vmem:[#allocation2 + $0x1b8] sm:$0xff]  ;;  %v301_v26 = vld [vmem:[%s2163_s9 + $0x30] sm:$0xff] }
  0x49   : > { %480 = vmatprep.mubr.f32.mxu0 %v2000_v0  ;;  %552 = vmatprep.mubr.f32.mxu1 %v2000_v0  ;;  %v821_v15 = vld [vmem:[#allocation2 + $0x128] sm:$0xff]  ;;  %v795_v25 = vld [vmem:[#allocation2 + $0x58] sm:$0xff]  ;;  %v822_v30 = vld [vmem:[#allocation2 + $0x130] sm:$0xff]  ;;  %v1790_v32 = vpack.c.bf16 %v839_v23, %v838_v18 }
  0x4a   : > { %1755 = vmatprep.subr.bf16.mxu0 %v1754_v54  ;;  %v1788_v27 = vpack.c.bf16 %v821_v15, %v820_v14  ;;  %v823_v33 = vld [vmem:[#allocation2 + $0x138] sm:$0xff]  ;;  %v1768_v34 = vpack.c.bf16 %v795_v25, %v794_v24  ;;  %v813_v35 = vld [vmem:[#allocation2 + $0xe8] sm:$0xff]  ;;  %v840_v36 = vld [vmem:[#allocation2 + $0x1c0] sm:$0xff] }
  0x4b   : > { %1757 = vmatpush3.bf16.msra.mxu0 %v1756_v56  ;;  %v841_v39 = vld [vmem:[#allocation2 + $0x1c8] sm:$0xff]  ;;  %v302_v40 = vld [vmem:[%s2163_s9 + $0x38] sm:$0xff]  ;;  %v1792_v41 = vpack.c.bf16 %v823_v33, %v822_v30  ;;  %v824_v44 = vld [vmem:[#allocation2 + $0x140] sm:$0xff] }
  0x4c   : > { %1445 = vmatmul.mubr.msk.f32.gmra.mrb[6].mxu0 %vm349_vm0, %v2220_v50  ;;  %1457 = vmatmul.mubr.msk.f32.gmra.mrb[6].mxu1 %vm349_vm0, %v2223_v51  ;;  %v1794_v43 = vpack.c.bf16 %v841_v39, %v840_v36  ;;  %v825_v45 = vld [vmem:[#allocation2 + $0x148] sm:$0xff]  ;;  %v843_v46 = vld [vmem:[#allocation2 + $0x1d8] sm:$0xff]  ;;  %v303_v47 = vld [vmem:[%s2163_s9 + $0x40] sm:$0xff] }
  0x4d   : > { %486 = vmatprep.mubr.f32.mxu0 %v2000_v0  ;;  %623 = vmatprep.mubr.f32.mxu1 %v2000_v0  ;;  %v1796_v48 = vpack.c.bf16 %v825_v45, %v824_v44  ;;  %v305_v52 = vld [vmem:[%s2163_s9 + $0x50] sm:$0xff]  ;;  %v306_v53 = vld [vmem:[%s2163_s9 + $0x58] sm:$0xff]  ;;  %v796_v54 = vld [vmem:[#allocation2 + $0x60] sm:$0xff] }
  0x4e   : > { %1759 = vmatprep.subr.bf16.mxu0 %v1758_v3  ;;  %v797_v55 = vld [vmem:[#allocation2 + $0x68] sm:$0xff]  ;;  %v815_v57 = vld [vmem:[#allocation2 + $0xf8] sm:$0xff]  ;;  %v798_v59 = vld [vmem:[#allocation2 + $0x70] sm:$0xff] }
  0x4f   : > { %1761 = vmatpush3.bf16.msra.mxu0 %v1760_v6  ;;  %v1772_v56 = vpack.c.bf16 %v797_v55, %v796_v54  ;;  %v799_v60 = vld [vmem:[#allocation2 + $0x78] sm:$0xff]  ;;  %v826_v61 = vld [vmem:[#allocation2 + $0x150] sm:$0xff]  ;;  %v829_v2 = vld [vmem:[#allocation2 + $0x168] sm:$0xff] }
  0x50   : > { %1446 = vmatmul.mubr.msk.f32.gmra.mrb[8].mxu0 %vm349_vm0, %v2232_v62  ;;  %1458 = vmatmul.mubr.msk.f32.vlgmr.msra.gmra.mrb[8].mxu1 %vm349_vm0, %v2178_v20  ;;  %v810_v20 = vld [vmem:[#allocation2 + $0xd0] sm:$0xff]  ;;  %v847_v5 = vld [vmem:[#allocation2 + $0x1f8] sm:$0xff]  ;;  %v1161_v10 = vld [vmem:[%s2550_s5] sm:$0xff] }
  0x51   : > { %492 = vmatprep.mubr.f32.mxu0 %v2000_v0  ;;  %629 = vmatprep.mubr.f32.mxu1 %v2000_v0  ;;  %v1766_v31 = vpack.c.bf16 %v811_v22, %v810_v20  ;;  %v830_v7 = vld [vmem:[#allocation2 + $0x170] sm:$0xff]  ;;  %v831_v8 = vld [vmem:[#allocation2 + $0x178] sm:$0xff]  ;;  %v1162_v11 = vld [vmem:[%s2550_s5 + $0x8] sm:$0xff] }
  0x52   : > { %1781 = vmatpush3.bf16.msra.mxu1 %v1780_v63  ;;  %1763 = vmatprep.subr.bf16.mxu0 %v1762_v16  ;;  %v1808_v9 = vpack.c.bf16 %v831_v8, %v830_v7  ;;  %v327_v16 = vld [vmem:[%s2547_s2] sm:$0xf]  ;;  %v1164_v30 = vld [vmem:[%s2550_s5 + $0x18] sm:$0xff]  ;;  %v1167_v54 = vld [vmem:[%s2550_s5 + $0x30] sm:$0xff] }
  0x53   : > { %1783 = vmatprep.subr.bf16.mxu1 %v1782_v4  ;;  %1765 = vmatpush3.bf16.msra.mxu0 %v1764_v19  ;;  %v846_v4 = vld [vmem:[#allocation2 + $0x1f0] sm:$0xff]  ;;  %v1168_v55 = vld [vmem:[%s2550_s5 + $0x38] sm:$0xff] }
  0x54   : > { %1447 = vmatmul.mubr.msk.f32.gmra.mrb[10].mxu0 %vm349_vm0, %v2241_v12  ;;  %1459 = vmatmul.mubr.msk.f32.gmra.mrb[10].mxu1 %vm349_vm0, %v2195_v28  ;;  %v812_v28 = vld [vmem:[#allocation2 + $0xe0] sm:$0xff]  ;;  %v1806_v6 = vpack.c.bf16 %v847_v5, %v846_v4 }
  0x55   : > { %498 = vmatprep.mubr.f32.mxu0 %v2000_v0  ;;  %635 = vmatprep.mubr.f32.mxu1 %v2000_v0  ;;  %v1770_v42 = vpack.c.bf16 %v813_v35, %v812_v28 }
  0x56   : > { %1785 = vmatpush3.bf16.msra.mxu1 %v1784_v13  ;;  %1767 = vmatprep.subr.bf16.mxu0 %v1766_v31  ;;  %v329_v13 = vlaneseq }
  0x57   : > { %1787 = vmatprep.subr.bf16.mxu1 %v1786_v17  ;;  %1769 = vmatpush3.bf16.msra.mxu0 %v1768_v34 }
  0x58   : > { %1448 = vmatmul.mubr.msk.f32.gmra.mrb[12].mxu0 %vm349_vm0, %v301_v26  ;;  %1460 = vmatmul.mubr.msk.f32.gmra.mrb[12].mxu1 %vm349_vm0, %v2206_v37  ;;  %v842_v37 = vld [vmem:[#allocation2 + $0x1d0] sm:$0xff]  ;;  %v330_v14 = vshrl.u32 %v329_v13, 7 }
  0x59   : > { %504 = vmatprep.mubr.f32.mxu0 %v2000_v0  ;;  %641 = vmatprep.mubr.f32.mxu1 %v2000_v0  ;;  %v1798_v49 = vpack.c.bf16 %v843_v46, %v842_v37 }
  0x5a   : > { %1789 = vmatpush3.bf16.msra.mxu1 %v1788_v27  ;;  %1771 = vmatprep.subr.bf16.mxu0 %v1770_v42  ;;  %v335_v15 = vsub.s32 1, %v330_v14  ;;  %v331_v17 = vsub.s32 0, %v330_v14  ;;  %v1163_v27 = vld [vmem:[%s2550_s5 + $0x10] sm:$0xff]  ;;  %v1166_v42 = vld [vmem:[%s2550_s5 + $0x28] sm:$0xff] }
  0x5b   : > { %1791 = vmatprep.subr.bf16.mxu1 %v1790_v32  ;;  %1773 = vmatpush3.bf16.msra.mxu0 %v1772_v56  ;;  %v1814_v39 = vpack.c.bf16 %v1164_v30, %v1163_v27 }
  0x5c   : > { %1449 = vmatmul.mubr.msk.f32.gmra.mrb[14].mxu0 %vm349_vm0, %v302_v40  ;;  %1461 = vmatmul.mubr.msk.f32.gmra.mrb[14].mxu1 %vm349_vm0, %v2220_v50  ;;  %v304_v50 = vld [vmem:[%s2163_s9 + $0x48] sm:$0xff]  ;;  %v2310_v18 = vrot.slane %v327_v16, %v335_v15  ;;  %v2312_v19 = vrot.slane %v327_v16, %v331_v17 }
  0x5d   : > { %510 = vmatprep.mubr.f32.mxu0 %v2000_v0  ;;  %647 = vmatprep.mubr.f32.mxu1 %v2000_v0 }
  0x5e   : > { %1793 = vmatpush3.bf16.msra.mxu1 %v1792_v41  ;;  %v1165_v41 = vld [vmem:[%s2550_s5 + $0x20] sm:$0xff] }
  0x5f   : > { %1795 = vmatprep.subr.bf16.mxu1 %v1794_v43 }
  0x60   : > { %1450 = vmatmul.mubr.msk.f32.gmra.mrb[16].mxu0 %vm349_vm0, %v303_v47  ;;  %1462 = vmatmul.mubr.msk.f32.gmra.mrb[16].mxu1 %vm349_vm0, %v2232_v62  ;;  %v827_v62 = vld [vmem:[#allocation2 + $0x158] sm:$0xff] }
  0x61   : > { %516 = vmatprep.mubr.f32.mxu0 %v2000_v0  ;;  %653 = vmatprep.mubr.f32.mxu1 %v2000_v0  ;;  %v1800_v63 = vpack.c.bf16 %v827_v62, %v826_v61  ;;  %v1822_v62 = vpack.c.bf16 %v1168_v55, %v1167_v54 }
  0x62   : > { %1797 = vmatpush3.bf16.msra.mxu1 %v1796_v48 }
  0x63   : > { %1799 = vmatprep.subr.bf16.mxu1 %v1798_v49  ;;  %v339_v49 = vsub.s32 2, %v330_v14 }
  0x64   : > { %1451 = vmatmul.mubr.msk.f32.gmra.mrb[18].mxu0 %vm349_vm0, %v304_v50  ;;  %1463 = vmatmul.mubr.msk.f32.gmra.mrb[18].mxu1 %vm349_vm0, %v2241_v12  ;;  %v1810_v12 = vpack.c.bf16 %v1162_v11, %v1161_v10 }
  0x65   : > { %522 = vmatprep.mubr.f32.mxu0 %v2000_v0  ;;  %659 = vmatprep.mubr.f32.mxu1 %v2000_v0  ;;  %v2355_v61 = vrot.slane %v327_v16, %v339_v49 }
  0x66   : > { %1801 = vmatpush3.bf16.msra.mxu1 %v1800_v63 }
  0x68   : > { %1452 = vmatmul.mubr.msk.f32.gmra.mrb[20].mxu0 %vm349_vm0, %v305_v52  ;;  %1464 = vmatmul.mubr.msk.f32.gmra.mrb[20].mxu1 %vm349_vm0, %v301_v26 }
  0x69   : > { %528 = vmatprep.mubr.f32.mxu0 %v2000_v0  ;;  %665 = vmatprep.mubr.f32.mxu1 %v2000_v0 }
  0x6c   : > { %1453 = vmatmul.mubr.msk.f32.gmra.mrb[22].mxu0 %vm349_vm0, %v306_v53  ;;  %1465 = vmatmul.mubr.msk.f32.gmra.mrb[22].mxu1 %vm349_vm0, %v302_v40 }
  0x6d   : > { %671 = vmatprep.mubr.f32.mxu1 %v2000_v0 }
  0x70   : > { %1466 = vmatmul.mubr.msk.f32.gmra.mrb[24].mxu1 %vm349_vm0, %v303_v47 }
  0x71   : > { %677 = vmatprep.mubr.f32.mxu1 %v2000_v0 }
  0x74   : > { %1467 = vmatmul.mubr.msk.f32.gmra.mrb[26].mxu1 %vm349_vm0, %v304_v50  ;;  %v1818_v50 = vpack.c.bf16 %v1166_v42, %v1165_v41 }
  0x75   : > { %683 = vmatprep.mubr.f32.mxu1 %v2000_v0 }
  0x78   : > { %1468 = vmatmul.mubr.msk.f32.gmra.mrb[28].mxu1 %vm349_vm0, %v305_v52 }
  0x79   : > { %689 = vmatprep.mubr.f32.mxu1 %v2000_v0 }
  0x7c   : > { %1469 = vmatmul.mubr.msk.f32.gmra.mrb[30].mxu1 %vm349_vm0, %v306_v53  ;;  %v343_v53 = vsub.s32 3, %v330_v14 }
  0x7d   : > { %695 = vmatprep.mubr.f32.mxu1 %v2000_v0 }
  0x80   : > { %1470 = vmatmul.mubr.msk.f32.gmra.mrb[32].mxu1 %vm349_vm0, %v2181_v21  ;;  %v814_v21 = vld [vmem:[#allocation2 + $0xf0] sm:$0xff] }
  0x81   : > { %701 = vmatprep.mubr.f32.mxu1 %v2000_v0  ;;  %v1774_v58 = vpack.c.bf16 %v815_v57, %v814_v21 }
  0x83   : > { %1775 = vmatprep.subr.bf16.mxu0 %v1774_v58 }
  0x84   : > { %1471 = vmatmul.mubr.msk.f32.gmra.mrb[34].mxu1 %vm349_vm0, %v2198_v29  ;;  %v1776_v29 = vpack.c.bf16 %v799_v60, %v798_v59 }
  0x85   : > { %707 = vmatprep.mubr.f32.mxu1 %v2000_v0 }
  0x86   : > { %1777 = vmatpush3.bf16.msra.mxu0 %v1776_v29 }
  0x87   : > { %1811 = vmatprep.subr.bf16.mxu0 %v1810_v12 }
  0x88   : > { %1472 = vmatmul.mubr.msk.f32.gmra.mrb[36].mxu1 %vm349_vm0, %v2209_v38  ;;  %v845_v38 = vld [vmem:[#allocation2 + $0x1e8] sm:$0xff] }
  0x89   : > { %713 = vmatprep.mubr.f32.mxu1 %v2000_v0  ;;  %v844_v0 = vld [vmem:[#allocation2 + $0x1e0] sm:$0xff] }
  0x8a   : > { %v1802_v1 = vpack.c.bf16 %v845_v38, %v844_v0  ;;  %v2358_v0 = vrot.slane %v327_v16, %v343_v53 }
  0x8c   : > { %1473 = vmatmul.mubr.msk.f32.gmra.mrb[38].mxu1 %vm349_vm0, %v2223_v51  ;;  %1803 = vmatprep.subr.bf16.mxu1 %v1802_v1  ;;  %v828_v51 = vld [vmem:[#allocation2 + $0x160] sm:$0xff] }
  0x8d   : > { %v1804_v3 = vpack.c.bf16 %v829_v2, %v828_v51 }
  0x8f   : > { %1805 = vmatpush3.bf16.msra.mxu1 %v1804_v3 }
  0x90   : > { %1807 = vmatprep.subr.bf16.mxu1 %v1806_v6 }
  0x93   : > { %1809 = vmatpush3.bf16.msra.mxu1 %v1808_v9 }
 0x113   : > { %v464_v20 = vpop.f32.mrb[0].mxu0  ;;  %v2314_v22 = vpop.f32.mrb[0].mxu1 }
 0x114   : > { %v465_v23 = vadd.f32 %v464_v20, %v2312_v19  ;;  %v466_v24 = vpop.f32.mrb[1].mxu0  ;;  %v2317_v25 = vpop.f32.mrb[1].mxu1 }
 0x115   : > { %v467_v26 = vadd.f32 %v466_v24, %v2310_v18 }
 0x116   : > { %v720_v31 = vmax.f32 %v465_v23, 0.0 }
 0x117   : > { %v721_v32 = vmax.f32 %v467_v26, 0.0  ;;  %v470_v33 = vpop.f32.mrb[2].mxu0  ;;  %v2326_v34 = vpop.f32.mrb[2].mxu1 }
 0x118   : > { %v471_v28 = vadd.f32 %v470_v33, %v2312_v19  ;;  %v472_v35 = vpop.f32.mrb[3].mxu0  ;;  %v2329_v36 = vpop.f32.mrb[3].mxu1 }
 0x119   : > { %v473_v40 = vadd.f32 %v472_v35, %v2310_v18  ;;  %919 = vmatprep.mubr.f32.mxu0 %v721_v32 }
 0x11a   : > { %v724_v43 = vmax.f32 %v471_v28, 0.0  ;;  %920 = vmatmul.mubr.f32.vlgmr.msra.gmra.mrb[24].mxu0 %v720_v31 }
 0x11b   : > { %v725_v44 = vmax.f32 %v473_v40, 0.0  ;;  %v476_v45 = vpop.f32.mrb[4].mxu0  ;;  %v2338_v37 = vpop.f32.mrb[4].mxu1  ;;  %1813 = vmatpush3.bf16.msra.mxu0 %v1810_v12 }
 0x11c   : > { %v477_v46 = vadd.f32 %v476_v45, %v2312_v19  ;;  %v478_v47 = vpop.f32.mrb[5].mxu0  ;;  %v2341_v48 = vpop.f32.mrb[5].mxu1  ;;  %1815 = vmatprep.subr.bf16.mxu0 %v1814_v39 }
 0x11d   : > { %v479_v52 = vadd.f32 %v478_v47, %v2310_v18  ;;  %924 = vmatprep.mubr.f32.mxu0 %v725_v44 }
 0x11e   : > { %v728_v56 = vmax.f32 %v477_v46, 0.0  ;;  %925 = vmatmul.mubr.f32.gmra.mrb[26].mxu0 %v724_v43 }
 0x11f   : > { %v729_v21 = vmax.f32 %v479_v52, 0.0  ;;  %v482_v57 = vpop.f32.mrb[6].mxu0  ;;  %v2350_v58 = vpop.f32.mrb[6].mxu1  ;;  %1817 = vmatpush3.bf16.msra.mxu0 %v1814_v39 }
 0x120   : > { %v483_v59 = vadd.f32 %v482_v57, %v2312_v19  ;;  %v484_v60 = vpop.f32.mrb[7].mxu0  ;;  %v2353_v29 = vpop.f32.mrb[7].mxu1  ;;  %1819 = vmatprep.subr.bf16.mxu0 %v1818_v50 }
 0x121   : > { %v485_v63 = vadd.f32 %v484_v60, %v2310_v18  ;;  %929 = vmatprep.mubr.f32.mxu0 %v729_v21 }
 0x122   : > { %v732_v38 = vmax.f32 %v483_v59, 0.0  ;;  %930 = vmatmul.mubr.f32.gmra.mrb[28].mxu0 %v728_v56 }
 0x123   : > { %v733_v1 = vmax.f32 %v485_v63, 0.0  ;;  %v488_v51 = vpop.f32.mrb[8].mxu0  ;;  %v625_v2 = vpop.f32.mrb[8].mxu1  ;;  %1821 = vmatpush3.bf16.msra.mxu0 %v1818_v50 }
 0x124   : > { %v489_v3 = vadd.f32 %v488_v51, %v2312_v19  ;;  %v626_v4 = vadd.f32 %v625_v2, %v2355_v61  ;;  %v490_v5 = vpop.f32.mrb[9].mxu0  ;;  %v627_v6 = vpop.f32.mrb[9].mxu1  ;;  %1823 = vmatprep.subr.bf16.mxu0 %v1822_v62 }
 0x125   : > { %v491_v7 = vadd.f32 %v490_v5, %v2310_v18  ;;  %v628_v8 = vadd.f32 %v627_v6, %v2358_v0  ;;  %934 = vmatprep.mubr.f32.mxu0 %v733_v1 }
 0x126   : > { %v736_v9 = vmax.f32 %v489_v3, 0.0  ;;  %935 = vmatmul.mubr.f32.gmra.mrb[30].mxu0 %v732_v38  ;;  %v722_v14 = vmax.f32 %v626_v4, 0.0 }
 0x127   : > { %v737_v10 = vmax.f32 %v491_v7, 0.0  ;;  %v723_v11 = vmax.f32 %v628_v8, 0.0  ;;  %v494_v12 = vpop.f32.mrb[10].mxu0  ;;  %v631_v13 = vpop.f32.mrb[10].mxu1  ;;  %1825 = vmatpush3.bf16.msra.mxu0 %v1822_v62 }
 0x128   : > { %v495_v15 = vadd.f32 %v494_v12, %v2312_v19  ;;  %v632_v16 = vadd.f32 %v631_v13, %v2355_v61  ;;  %v496_v17 = vpop.f32.mrb[11].mxu0  ;;  %v633_v20 = vpop.f32.mrb[11].mxu1 }
 0x129   : > { %v497_v23 = vadd.f32 %v496_v17, %v2310_v18  ;;  %v634_v24 = vadd.f32 %v633_v20, %v2358_v0  ;;  %939 = vmatprep.mubr.f32.mxu0 %v737_v10  ;;  %1064 = vmatprep.mubr.f32.mxu1 %v723_v11 }
 0x12a   : > { %v740_v26 = vmax.f32 %v495_v15, 0.0  ;;  %940 = vmatmul.mubr.f32.gmra.mrb[32].mxu0 %v736_v9  ;;  %1065 = vmatmul.mubr.f32.vlgmr.msra.gmra.mrb[40].mxu1 %v722_v14  ;;  %v726_v33 = vmax.f32 %v632_v16, 0.0 }
 0x12b   : > { %v741_v27 = vmax.f32 %v497_v23, 0.0  ;;  %v727_v30 = vmax.f32 %v634_v24, 0.0  ;;  %v500_v31 = vpop.f32.mrb[12].mxu0  ;;  %v637_v32 = vpop.f32.mrb[12].mxu1 }
 0x12c   : > { %v501_v28 = vadd.f32 %v500_v31, %v2312_v19  ;;  %v638_v35 = vadd.f32 %v637_v32, %v2355_v61  ;;  %v502_v39 = vpop.f32.mrb[13].mxu0  ;;  %v639_v40 = vpop.f32.mrb[13].mxu1 }
 0x12d   : > { %v503_v41 = vadd.f32 %v502_v39, %v2310_v18  ;;  %v640_v42 = vadd.f32 %v639_v40, %v2358_v0  ;;  %944 = vmatprep.mubr.f32.mxu0 %v741_v27  ;;  %1069 = vmatprep.mubr.f32.mxu1 %v727_v30 }
 0x12e   : > { %v744_v43 = vmax.f32 %v501_v28, 0.0  ;;  %945 = vmatmul.mubr.f32.gmra.mrb[34].mxu0 %v740_v26  ;;  %1070 = vmatmul.mubr.f32.gmra.mrb[42].mxu1 %v726_v33  ;;  %v730_v49 = vmax.f32 %v638_v35, 0.0 }
 0x12f   : > { %v745_v44 = vmax.f32 %v503_v41, 0.0  ;;  %v731_v45 = vmax.f32 %v640_v42, 0.0  ;;  %v506_v46 = vpop.f32.mrb[14].mxu0  ;;  %v643_v47 = vpop.f32.mrb[14].mxu1 }
 0x130   : > { %v507_v50 = vadd.f32 %v506_v46, %v2312_v19  ;;  %v644_v52 = vadd.f32 %v643_v47, %v2355_v61  ;;  %v508_v53 = vpop.f32.mrb[15].mxu0  ;;  %v645_v54 = vpop.f32.mrb[15].mxu1 }
 0x131   : > { %v509_v55 = vadd.f32 %v508_v53, %v2310_v18  ;;  %v646_v56 = vadd.f32 %v645_v54, %v2358_v0  ;;  %949 = vmatprep.mubr.f32.mxu0 %v745_v44  ;;  %1074 = vmatprep.mubr.f32.mxu1 %v731_v45 }
 0x132   : > { %v748_v21 = vmax.f32 %v507_v50, 0.0  ;;  %950 = vmatmul.mubr.f32.gmra.mrb[36].mxu0 %v744_v43  ;;  %1075 = vmatmul.mubr.f32.gmra.mrb[44].mxu1 %v730_v49  ;;  %v734_v63 = vmax.f32 %v644_v52, 0.0  ;;  %v539_v50 = vadd.f32 %v2317_v25, %v2310_v18 }
 0x133   : > { %v749_v57 = vmax.f32 %v509_v55, 0.0  ;;  %v735_v59 = vmax.f32 %v646_v56, 0.0  ;;  %v512_v60 = vpop.f32.mrb[16].mxu0  ;;  %v649_v62 = vpop.f32.mrb[16].mxu1 }
 0x134   : > { %v513_v38 = vadd.f32 %v512_v60, %v2312_v19  ;;  %v650_v1 = vadd.f32 %v649_v62, %v2355_v61  ;;  %v514_v51 = vpop.f32.mrb[17].mxu0  ;;  %v651_v2 = vpop.f32.mrb[17].mxu1  ;;  %v769_v25 = vmax.f32 %v539_v50, 0.0 }
 0x135   : > { %v515_v3 = vadd.f32 %v514_v51, %v2310_v18  ;;  %v652_v4 = vadd.f32 %v651_v2, %v2358_v0  ;;  %954 = vmatprep.mubr.f32.mxu0 %v749_v57  ;;  %1079 = vmatprep.mubr.f32.mxu1 %v735_v59  ;;  %v537_v57 = vadd.f32 %v2314_v22, %v2312_v19 }
 0x136   : > { %v752_v5 = vmax.f32 %v513_v38, 0.0  ;;  %955 = vmatmul.mubr.f32.gmra.mrb[38].mxu0 %v748_v21  ;;  %1080 = vmatmul.mubr.f32.gmra.mrb[46].mxu1 %v734_v63  ;;  %v738_v10 = vmax.f32 %v650_v1, 0.0  ;;  %v545_v63 = vadd.f32 %v2329_v36, %v2310_v18  ;;  %v543_v22 = vadd.f32 %v2326_v34, %v2312_v19 }
 0x137   : > { %v753_v6 = vmax.f32 %v515_v3, 0.0  ;;  %v739_v7 = vmax.f32 %v652_v4, 0.0  ;;  %v518_v8 = vpop.f32.mrb[18].mxu0  ;;  %v655_v9 = vpop.f32.mrb[18].mxu1  ;;  %v768_v2 = vmax.f32 %v537_v57, 0.0  ;;  %v551_v36 = vadd.f32 %v2341_v48, %v2310_v18 }
 0x138   : > { %v519_v11 = vadd.f32 %v518_v8, %v2312_v19  ;;  %v656_v12 = vadd.f32 %v655_v9, %v2355_v61  ;;  %v520_v13 = vpop.f32.mrb[19].mxu0  ;;  %v657_v14 = vpop.f32.mrb[19].mxu1  ;;  %v549_v34 = vadd.f32 %v2338_v37, %v2312_v19  ;;  %v557_v48 = vadd.f32 %v2353_v29, %v2310_v18 }
 0x139   : > { %v521_v15 = vadd.f32 %v520_v13, %v2310_v18  ;;  %v658_v16 = vadd.f32 %v657_v14, %v2358_v0  ;;  %959 = vmatprep.mubr.f32.mxu0 %v753_v6  ;;  %1084 = vmatprep.mubr.f32.mxu1 %v739_v7  ;;  %v773_v6 = vmax.f32 %v545_v63, 0.0  ;;  %v777_v14 = vmax.f32 %v551_v36, 0.0  ;;  %v1173_v63 = vld [vmem:[%s2550_s5 + $0x60] sm:$0xff] }
 0x13a   : > { %v756_v17 = vmax.f32 %v519_v11, 0.0  ;;  %960 = vmatmul.mubr.f32.gmra.mrb[40].mxu0 %v752_v5  ;;  %1085 = vmatmul.mubr.f32.gmra.mrb[48].mxu1 %v738_v10  ;;  %v742_v27 = vmax.f32 %v656_v12, 0.0  ;;  %v772_v10 = vmax.f32 %v543_v22, 0.0  ;;  %v555_v37 = vadd.f32 %v2350_v58, %v2312_v19 }
 0x13b   : > { %v757_v20 = vmax.f32 %v521_v15, 0.0  ;;  %v743_v23 = vmax.f32 %v658_v16, 0.0  ;;  %v524_v24 = vpop.f32.mrb[20].mxu0  ;;  %v661_v26 = vpop.f32.mrb[20].mxu1 }
 0x13c   : > { %v525_v30 = vadd.f32 %v524_v24, %v2312_v19  ;;  %v662_v31 = vadd.f32 %v661_v26, %v2355_v61  ;;  %v526_v32 = vpop.f32.mrb[21].mxu0  ;;  %v663_v33 = vpop.f32.mrb[21].mxu1 }
 0x13d   : > { %v527_v28 = vadd.f32 %v526_v32, %v2310_v18  ;;  %v664_v35 = vadd.f32 %v663_v33, %v2358_v0  ;;  %964 = vmatprep.mubr.f32.mxu0 %v757_v20  ;;  %1089 = vmatprep.mubr.f32.mxu1 %v743_v23  ;;  %v776_v20 = vmax.f32 %v549_v34, 0.0 }
 0x13e   : > { %v760_v39 = vmax.f32 %v525_v30, 0.0  ;;  %965 = vmatmul.mubr.f32.gmra.mrb[42].mxu0 %v756_v17  ;;  %1090 = vmatmul.mubr.f32.gmra.mrb[50].mxu1 %v742_v27  ;;  %v746_v44 = vmax.f32 %v662_v31, 0.0  ;;  %v781_v27 = vmax.f32 %v557_v48, 0.0  ;;  %v780_v31 = vmax.f32 %v555_v37, 0.0 }
 0x13f   : > { %v761_v40 = vmax.f32 %v527_v28, 0.0  ;;  %v747_v41 = vmax.f32 %v664_v35, 0.0  ;;  %v530_v42 = vpop.f32.mrb[22].mxu0  ;;  %v667_v43 = vpop.f32.mrb[22].mxu1 }
 0x140   : > { %v531_v45 = vadd.f32 %v530_v42, %v2312_v19  ;;  %v668_v46 = vadd.f32 %v667_v43, %v2355_v61  ;;  %v532_v47 = vpop.f32.mrb[23].mxu0  ;;  %v669_v49 = vpop.f32.mrb[23].mxu1 }
 0x141   : > { %v533_v52 = vadd.f32 %v532_v47, %v2310_v18  ;;  %v670_v53 = vadd.f32 %v669_v49, %v2358_v0  ;;  %969 = vmatprep.mubr.f32.mxu0 %v761_v40  ;;  %1094 = vmatprep.mubr.f32.mxu1 %v747_v41 }
 0x142   : > { %v764_v54 = vmax.f32 %v531_v45, 0.0  ;;  %970 = vmatmul.mubr.f32.gmra.mrb[44].mxu0 %v760_v39  ;;  %1095 = vmatmul.mubr.f32.gmra.mrb[52].mxu1 %v746_v44  ;;  %v750_v59 = vmax.f32 %v668_v46, 0.0 }
 0x143   : > { %v765_v55 = vmax.f32 %v533_v52, 0.0  ;;  %v751_v56 = vmax.f32 %v670_v53, 0.0  ;;  %v673_v21 = vpop.f32.mrb[24].mxu1 }
 0x144   : > { %v674_v60 = vadd.f32 %v673_v21, %v2355_v61  ;;  %v675_v62 = vpop.f32.mrb[25].mxu1 }
 0x145   : > { %v676_v38 = vadd.f32 %v675_v62, %v2358_v0  ;;  %974 = vmatprep.mubr.f32.mxu0 %v765_v55  ;;  %1099 = vmatprep.mubr.f32.mxu1 %v751_v56 }
 0x146   : > { %975 = vmatmul.mubr.f32.gmra.mrb[46].mxu0 %v764_v54  ;;  %1100 = vmatmul.mubr.f32.gmra.mrb[54].mxu1 %v750_v59  ;;  %v754_v3 = vmax.f32 %v674_v60, 0.0  ;;  %v1169_v59 = vld [vmem:[%s2550_s5 + $0x40] sm:$0xff]  ;;  %v1170_v60 = vld [vmem:[%s2550_s5 + $0x48] sm:$0xff] }
 0x147   : > { %v755_v1 = vmax.f32 %v676_v38, 0.0  ;;  %v679_v51 = vpop.f32.mrb[26].mxu1  ;;  %979 = vmatprep.mubr.f32.mxu0 %v769_v25  ;;  %v1826_v62 = vpack.c.bf16 %v1170_v60, %v1169_v59  ;;  %v1174_v38 = vld [vmem:[%s2550_s5 + $0x68] sm:$0xff] }
 0x148   : > { %v680_v4 = vadd.f32 %v679_v51, %v2355_v61  ;;  %v681_v5 = vpop.f32.mrb[27].mxu1  ;;  %v1175_v51 = vld [vmem:[%s2550_s5 + $0x70] sm:$0xff] }
 0x149   : > { %v682_v7 = vadd.f32 %v681_v5, %v2358_v0  ;;  %1104 = vmatprep.mubr.f32.mxu1 %v755_v1  ;;  %1827 = vmatprep.subr.bf16.mxu0 %v1826_v62  ;;  %v1834_v1 = vpack.c.bf16 %v1174_v38, %v1173_v63 }
 0x14a   : > { %980 = vmatmul.mubr.f32.gmra.mrb[48].mxu0 %v768_v2  ;;  %1105 = vmatmul.mubr.f32.gmra.mrb[56].mxu1 %v754_v3  ;;  %v758_v11 = vmax.f32 %v680_v4, 0.0  ;;  %v1176_v2 = vld [vmem:[%s2550_s5 + $0x78] sm:$0xff] }
 0x14b   : > { %v759_v8 = vmax.f32 %v682_v7, 0.0  ;;  %v685_v9 = vpop.f32.mrb[28].mxu1  ;;  %984 = vmatprep.mubr.f32.mxu0 %v773_v6  ;;  %1829 = vmatpush3.bf16.msra.mxu0 %v1826_v62  ;;  %v1838_v22 = vpack.c.bf16 %v1176_v2, %v1175_v51 }
 0x14c   : > { %v686_v12 = vadd.f32 %v685_v9, %v2355_v61  ;;  %v687_v13 = vpop.f32.mrb[29].mxu1 }
 0x14d   : > { %v688_v15 = vadd.f32 %v687_v13, %v2358_v0  ;;  %1109 = vmatprep.mubr.f32.mxu1 %v759_v8  ;;  %v2451_v13 = vld [vmem:[%s2549_s4] ss:$0 sm:$0xff] }
 0x14e   : > { %985 = vmatmul.mubr.f32.gmra.mrb[50].mxu0 %v772_v10  ;;  %1110 = vmatmul.mubr.f32.gmra.mrb[58].mxu1 %v758_v11  ;;  %v762_v23 = vmax.f32 %v686_v12, 0.0 }
 0x14f   : > { %v763_v16 = vmax.f32 %v688_v15, 0.0  ;;  %v691_v17 = vpop.f32.mrb[30].mxu1  ;;  %989 = vmatprep.mubr.f32.mxu0 %v777_v14 }
 0x150   : > { %v692_v24 = vadd.f32 %v691_v17, %v2355_v61  ;;  %v693_v26 = vpop.f32.mrb[31].mxu1 }
 0x151   : > { %v694_v30 = vadd.f32 %v693_v26, %v2358_v0  ;;  %1114 = vmatprep.mubr.f32.mxu1 %v763_v16 }
 0x152   : > { %990 = vmatmul.mubr.f32.gmra.mrb[52].mxu0 %v776_v20  ;;  %1115 = vmatmul.mubr.f32.gmra.mrb[60].mxu1 %v762_v23  ;;  %v766_v32 = vmax.f32 %v692_v24, 0.0 }
 0x153   : > { %v767_v18 = vmax.f32 %v694_v30, 0.0  ;;  %v697_v29 = vpop.f32.mrb[32].mxu1  ;;  %994 = vmatprep.mubr.f32.mxu0 %v781_v27 }
 0x154   : > { %v698_v33 = vadd.f32 %v697_v29, %v2355_v61  ;;  %v699_v28 = vpop.f32.mrb[33].mxu1 }
 0x155   : > { %v700_v19 = vadd.f32 %v699_v28, %v2358_v0  ;;  %1119 = vmatprep.mubr.f32.mxu1 %v767_v18 }
 0x156   : > { %995 = vmatmul.mubr.f32.gmra.mrb[54].mxu0 %v780_v31  ;;  %1120 = vmatmul.mubr.f32.gmra.mrb[62].mxu1 %v766_v32  ;;  %v770_v39 = vmax.f32 %v698_v33, 0.0 }
 0x157   : > { %v771_v58 = vmax.f32 %v700_v19, 0.0  ;;  %v703_v35 = vpop.f32.mrb[34].mxu1 }
 0x158   : > { %v704_v40 = vadd.f32 %v703_v35, %v2355_v61  ;;  %v705_v41 = vpop.f32.mrb[35].mxu1 }
 0x159   : > { %v706_v42 = vadd.f32 %v705_v41, %v2358_v0  ;;  %1124 = vmatprep.mubr.f32.mxu1 %v771_v58 }
 0x15a   : > { %1125 = vmatmul.mubr.f32.gmra.mrb[64].mxu1 %v770_v39  ;;  %v774_v45 = vmax.f32 %v704_v40, 0.0 }
 0x15b   : > { %v775_v43 = vmax.f32 %v706_v42, 0.0  ;;  %v709_v44 = vpop.f32.mrb[36].mxu1 }
 0x15c   : > { %v710_v46 = vadd.f32 %v709_v44, %v2355_v61  ;;  %v711_v47 = vpop.f32.mrb[37].mxu1 }
 0x15d   : > { %v712_v49 = vadd.f32 %v711_v47, %v2358_v0  ;;  %1129 = vmatprep.mubr.f32.mxu1 %v775_v43 }
 0x15e   : > { %1130 = vmatmul.mubr.f32.gmra.mrb[66].mxu1 %v774_v45  ;;  %v778_v53 = vmax.f32 %v710_v46, 0.0 }
 0x15f   : > { %v779_v50 = vmax.f32 %v712_v49, 0.0  ;;  %v715_v52 = vpop.f32.mrb[38].mxu1 }
 0x160   : > { %v716_v54 = vadd.f32 %v715_v52, %v2355_v61  ;;  %v717_v55 = vpop.f32.mrb[39].mxu1  ;;  %v1171_v61 = vld [vmem:[%s2550_s5 + $0x50] sm:$0xff] }
 0x161   : > { %v718_v56 = vadd.f32 %v717_v55, %v2358_v0  ;;  %1134 = vmatprep.mubr.f32.mxu1 %v779_v50  ;;  %v1172_v0 = vld [vmem:[%s2550_s5 + $0x58] sm:$0xff] }
 0x162   : > { %1135 = vmatmul.mubr.f32.gmra.mrb[68].mxu1 %v778_v53  ;;  %v782_v57 = vmax.f32 %v716_v54, 0.0  ;;  %v1830_v25 = vpack.c.bf16 %v1172_v0, %v1171_v61 }
 0x163   : > { %v783_v21 = vmax.f32 %v718_v56, 0.0 }
 0x164   : > { %1831 = vmatprep.subr.bf16.mxu0 %v1830_v25 }
 0x165   : > { %1139 = vmatprep.mubr.f32.mxu1 %v783_v21  ;;  %1833 = vmatpush3.bf16.msra.mxu0 %v1830_v25 }
 0x166   : > { %1140 = vmatmul.mubr.f32.gmra.mrb[70].mxu1 %v782_v57  ;;  %1835 = vmatprep.subr.bf16.mxu0 %v1834_v1 }
 0x169   : > { %1837 = vmatpush3.bf16.msra.mxu0 %v1834_v1 }
 0x16a   : > { %1839 = vmatprep.subr.bf16.mxu0 %v1838_v22 }
 0x16d   : > { %1841 = vmatpush3.bf16.msra.mxu0 %v1838_v22 }
 0x1ed   : > { %v1514_v3 = vpop.f32.mrb[24].mxu0 }
 0x1ee   : > { %v1515_v4 = vpop.f32.mrb[25].mxu0 }
 0x1ef   : > { %v1516_v5 = vadd.f32 %v1515_v4, %v1514_v3 }
 0x1f1   : > { %v1517_v6 = vpop.f32.mrb[26].mxu0  ;;  %v922_v17 = vadd.f32 %v1516_v5, %v2451_v13 }
 0x1f2   : > { %v1518_v36 = vpop.f32.mrb[27].mxu0 }
 0x1f3   : > { %v1519_v7 = vadd.f32 %v1518_v36, %v1517_v6 }
 0x1f5   : > { %v1520_v8 = vpop.f32.mrb[28].mxu0  ;;  %v927_v18 = vadd.f32 %v1519_v7, %v2451_v13 }
 0x1f6   : > { %v1521_v9 = vpop.f32.mrb[29].mxu0 }
 0x1f7   : > { %v1522_v10 = vadd.f32 %v1521_v9, %v1520_v8 }
 0x1f9   : > { %v1523_v34 = vpop.f32.mrb[30].mxu0  ;;  %v932_v39 = vadd.f32 %v1522_v10, %v2451_v13 }
 0x1fa   : > { %v1524_v11 = vpop.f32.mrb[31].mxu0 }
 0x1fb   : > { %v1525_v12 = vadd.f32 %v1524_v11, %v1523_v34 }
 0x1fd   : > { %v1594_v14 = vpop.f32.mrb[40].mxu1  ;;  %v1526_v48 = vpop.f32.mrb[32].mxu0  ;;  %v937_v49 = vadd.f32 %v1525_v12, %v2451_v13 }
 0x1fe   : > { %v1595_v15 = vpop.f32.mrb[41].mxu1  ;;  %v1527_v16 = vpop.f32.mrb[33].mxu0 }
 0x1ff   : > { %v1596_v20 = vadd.f32 %v1595_v15, %v1594_v14  ;;  %v1528_v37 = vadd.f32 %v1527_v16, %v1526_v48 }
 0x201   : > { %v1067_v23 = vadd.f32 %v1596_v20, %v922_v17  ;;  %v1597_v24 = vpop.f32.mrb[42].mxu1  ;;  %v1529_v26 = vpop.f32.mrb[34].mxu0  ;;  %v942_v59 = vadd.f32 %v1528_v37, %v2451_v13 }
 0x202   : > { %v1598_v27 = vpop.f32.mrb[43].mxu1  ;;  %v1530_v30 = vpop.f32.mrb[35].mxu0 }
 0x203   : > { %v1145_v29 = vmax.f32 %v1067_v23, 0.0  ;;  %v1599_v31 = vadd.f32 %v1598_v27, %v1597_v24  ;;  %v1531_v32 = vadd.f32 %v1530_v30, %v1529_v26 }
 0x205   : > { %v1072_v33 = vadd.f32 %v1599_v31, %v927_v18  ;;  %v1600_v28 = vpop.f32.mrb[44].mxu1  ;;  %1706 = vmatprep.mubr.f32.mxu0 %v1145_v29  ;;  %v1532_v19 = vpop.f32.mrb[36].mxu0  ;;  %v947_v51 = vadd.f32 %v1531_v32, %v2451_v13 }
 0x206   : > { %v1601_v58 = vpop.f32.mrb[45].mxu1  ;;  %v1533_v35 = vpop.f32.mrb[37].mxu0 }
 0x207   : > { %v1146_v40 = vmax.f32 %v1072_v33, 0.0  ;;  %v1602_v41 = vadd.f32 %v1601_v58, %v1600_v28  ;;  %v1534_v42 = vadd.f32 %v1533_v35, %v1532_v19 }
 0x209   : > { %v1077_v43 = vadd.f32 %v1602_v41, %v932_v39  ;;  %v1603_v44 = vpop.f32.mrb[46].mxu1  ;;  %1707 = vmatmul.mubr.f32.vlgmr.msra.gmra.mrb[56].mxu0 %v1146_v40  ;;  %v1535_v45 = vpop.f32.mrb[38].mxu0  ;;  %v952_v8 = vadd.f32 %v1534_v42, %v2451_v13 }
 0x20a   : > { %v1604_v46 = vpop.f32.mrb[47].mxu1  ;;  %v1536_v47 = vpop.f32.mrb[39].mxu0 }
 0x20b   : > { %v1147_v50 = vmax.f32 %v1077_v43, 0.0  ;;  %v1605_v52 = vadd.f32 %v1604_v46, %v1603_v44  ;;  %v1537_v53 = vadd.f32 %v1536_v47, %v1535_v45 }
 0x20d   : > { %v1082_v54 = vadd.f32 %v1605_v52, %v937_v49  ;;  %v1606_v55 = vpop.f32.mrb[48].mxu1  ;;  %1709 = vmatprep.mubr.f32.mxu0 %v1147_v50  ;;  %v1538_v56 = vpop.f32.mrb[40].mxu0  ;;  %v957_v16 = vadd.f32 %v1537_v53, %v2451_v13 }
 0x20e   : > { %v1607_v21 = vpop.f32.mrb[49].mxu1  ;;  %v1539_v57 = vpop.f32.mrb[41].mxu0 }
 0x20f   : > { %v1148_v60 = vmax.f32 %v1082_v54, 0.0  ;;  %v1608_v62 = vadd.f32 %v1607_v21, %v1606_v55  ;;  %v1540_v61 = vadd.f32 %v1539_v57, %v1538_v56 }
 0x211   : > { %v1087_v0 = vadd.f32 %v1608_v62, %v942_v59  ;;  %v1609_v25 = vpop.f32.mrb[50].mxu1  ;;  %1710 = vmatmul.mubr.f32.gmra.mrb[58].mxu0 %v1148_v60  ;;  %v1541_v63 = vpop.f32.mrb[42].mxu0  ;;  %v962_v18 = vadd.f32 %v1540_v61, %v2451_v13 }
 0x212   : > { %v1610_v38 = vpop.f32.mrb[51].mxu1  ;;  %v1542_v1 = vpop.f32.mrb[43].mxu0 }
 0x213   : > { %v1149_v2 = vmax.f32 %v1087_v0, 0.0  ;;  %v1611_v22 = vadd.f32 %v1610_v38, %v1609_v25  ;;  %v1543_v3 = vadd.f32 %v1542_v1, %v1541_v63 }
 0x215   : > { %v1092_v4 = vadd.f32 %v1611_v22, %v947_v51  ;;  %v1612_v5 = vpop.f32.mrb[52].mxu1  ;;  %1712 = vmatprep.mubr.f32.mxu0 %v1149_v2  ;;  %v1544_v6 = vpop.f32.mrb[44].mxu0  ;;  %v967_v39 = vadd.f32 %v1543_v3, %v2451_v13 }
 0x216   : > { %v1613_v36 = vpop.f32.mrb[53].mxu1  ;;  %v1545_v7 = vpop.f32.mrb[45].mxu0 }
 0x217   : > { %v1150_v9 = vmax.f32 %v1092_v4, 0.0  ;;  %v1614_v10 = vadd.f32 %v1613_v36, %v1612_v5  ;;  %v1546_v34 = vadd.f32 %v1545_v7, %v1544_v6 }
 0x219   : > { %v1097_v11 = vadd.f32 %v1614_v10, %v952_v8  ;;  %v1615_v12 = vpop.f32.mrb[54].mxu1  ;;  %1713 = vmatmul.mubr.f32.gmra.mrb[60].mxu0 %v1150_v9  ;;  %v1547_v14 = vpop.f32.mrb[46].mxu0  ;;  %v972_v49 = vadd.f32 %v1546_v34, %v2451_v13 }
 0x21a   : > { %v1616_v48 = vpop.f32.mrb[55].mxu1  ;;  %v1548_v15 = vpop.f32.mrb[47].mxu0 }
 0x21b   : > { %v1151_v17 = vmax.f32 %v1097_v11, 0.0  ;;  %v1617_v20 = vadd.f32 %v1616_v48, %v1615_v12  ;;  %v1549_v37 = vadd.f32 %v1548_v15, %v1547_v14 }
 0x21d   : > { %v1102_v23 = vadd.f32 %v1617_v20, %v957_v16  ;;  %v1550_v24 = vpop.f32.mrb[48].mxu0  ;;  %v1618_v26 = vpop.f32.mrb[56].mxu1  ;;  %1715 = vmatprep.mubr.f32.mxu0 %v1151_v17  ;;  %v977_v59 = vadd.f32 %v1549_v37, %v2451_v13  ;;  %v1475_v37 = vld [vmem:[%s2551_s6] ss:$0 sm:$0xff] }
 0x21e   : > { %v1551_v27 = vpop.f32.mrb[49].mxu0  ;;  %v1619_v30 = vpop.f32.mrb[57].mxu1 }
 0x21f   : > { %v1152_v29 = vmax.f32 %v1102_v23, 0.0  ;;  %v1552_v31 = vadd.f32 %v1551_v27, %v1550_v24  ;;  %v1620_v32 = vadd.f32 %v1619_v30, %v1618_v26 }
 0x221   : > { %v1107_v33 = vadd.f32 %v1620_v32, %v962_v18  ;;  %v1553_v28 = vpop.f32.mrb[50].mxu0  ;;  %v1621_v19 = vpop.f32.mrb[58].mxu1  ;;  %1716 = vmatmul.mubr.f32.gmra.mrb[62].mxu0 %v1152_v29  ;;  %v982_v38 = vadd.f32 %v1552_v31, %v2451_v13 }
 0x222   : > { %v1554_v58 = vpop.f32.mrb[51].mxu0  ;;  %v1622_v35 = vpop.f32.mrb[59].mxu1 }
 0x223   : > { %v1153_v40 = vmax.f32 %v1107_v33, 0.0  ;;  %v1555_v41 = vadd.f32 %v1554_v58, %v1553_v28  ;;  %v1623_v42 = vadd.f32 %v1622_v35, %v1621_v19 }
 0x225   : > { %v1112_v43 = vadd.f32 %v1623_v42, %v967_v39  ;;  %v1556_v44 = vpop.f32.mrb[52].mxu0  ;;  %v1624_v45 = vpop.f32.mrb[60].mxu1  ;;  %1718 = vmatprep.mubr.f32.mxu0 %v1153_v40  ;;  %v987_v4 = vadd.f32 %v1555_v41, %v2451_v13 }
 0x226   : > { %v1557_v46 = vpop.f32.mrb[53].mxu0  ;;  %v1625_v47 = vpop.f32.mrb[61].mxu1 }
 0x227   : > { %v1154_v50 = vmax.f32 %v1112_v43, 0.0  ;;  %v1558_v52 = vadd.f32 %v1557_v46, %v1556_v44  ;;  %v1626_v53 = vadd.f32 %v1625_v47, %v1624_v45 }
 0x229   : > { %v1117_v54 = vadd.f32 %v1626_v53, %v972_v49  ;;  %v1559_v55 = vpop.f32.mrb[54].mxu0  ;;  %v1627_v56 = vpop.f32.mrb[62].mxu1  ;;  %1719 = vmatmul.mubr.f32.gmra.mrb[64].mxu0 %v1154_v50  ;;  %v992_v9 = vadd.f32 %v1558_v52, %v2451_v13 }
 0x22a   : > { %v1560_v21 = vpop.f32.mrb[55].mxu0  ;;  %v1628_v57 = vpop.f32.mrb[63].mxu1 }
 0x22b   : > { %v1155_v60 = vmax.f32 %v1117_v54, 0.0  ;;  %v1561_v62 = vadd.f32 %v1560_v21, %v1559_v55  ;;  %v1629_v61 = vadd.f32 %v1628_v57, %v1627_v56 }
 0x22d   : > { %v1122_v0 = vadd.f32 %v1629_v61, %v977_v59  ;;  %v1630_v25 = vpop.f32.mrb[64].mxu1  ;;  %1721 = vmatprep.mubr.f32.mxu0 %v1155_v60  ;;  %v997_v48 = vadd.f32 %v1561_v62, %v2451_v13 }
 0x22e   : > { %v1631_v63 = vpop.f32.mrb[65].mxu1 }
 0x22f   : > { %v1156_v1 = vmax.f32 %v1122_v0, 0.0  ;;  %v1632_v51 = vadd.f32 %v1631_v63, %v1630_v25 }
 0x231   : > { %v1127_v2 = vadd.f32 %v1632_v51, %v982_v38  ;;  %v1633_v22 = vpop.f32.mrb[66].mxu1  ;;  %1722 = vmatmul.mubr.f32.gmra.mrb[66].mxu0 %v1156_v1 }
 0x232   : > { %v1634_v3 = vpop.f32.mrb[67].mxu1 }
 0x233   : > { %v1157_v5 = vmax.f32 %v1127_v2, 0.0  ;;  %v1635_v6 = vadd.f32 %v1634_v3, %v1633_v22 }
 0x235   : > { %v1132_v36 = vadd.f32 %v1635_v6, %v987_v4  ;;  %v1636_v7 = vpop.f32.mrb[68].mxu1  ;;  %1724 = vmatprep.mubr.f32.mxu0 %v1157_v5 }
 0x236   : > { %v1637_v8 = vpop.f32.mrb[69].mxu1 }
 0x237   : > { %v1158_v10 = vmax.f32 %v1132_v36, 0.0  ;;  %v1638_v34 = vadd.f32 %v1637_v8, %v1636_v7 }
 0x239   : > { %v1137_v11 = vadd.f32 %v1638_v34, %v992_v9  ;;  %v1639_v12 = vpop.f32.mrb[70].mxu1  ;;  %1725 = vmatmul.mubr.f32.gmra.mrb[68].mxu0 %v1158_v10 }
 0x23a   : > { %v1640_v14 = vpop.f32.mrb[71].mxu1 }
 0x23b   : > { %v1159_v15 = vmax.f32 %v1137_v11, 0.0  ;;  %v1641_v16 = vadd.f32 %v1640_v14, %v1639_v12 }
 0x23d   : > { %v1142_v17 = vadd.f32 %v1641_v16, %v997_v48  ;;  %1727 = vmatprep.mubr.f32.mxu0 %v1159_v15 }
 0x23f   : > { %v1160_v20 = vmax.f32 %v1142_v17, 0.0 }
 0x241   : > { %1728 = vmatmul.mubr.f32.gmra.mrb[70].mxu0 %v1160_v20 }
 0x2dc   : > { %v1708_v23 = vpop.f32.mrb[56].mxu0 }
 0x2dd   : > { %v1256_v24 = vadd.f32 %v1708_v23, %v1475_v37  ;;  %v1250_v26 = vpop.f32.mrb[57].mxu0 }
 0x2de   : > { %v1251_v27 = vadd.f32 %v1475_v37, %v1250_v26 }
 0x2df   : > { %1330 = vst [vmem:[%s2475_s23 + $0x8] sm:$0xff] %v1256_v24 }
 0x2e0   : > { %1329 = vst [vmem:[%s2475_s23] sm:$0xff] %v1251_v27 }
 0x2e4   : > { %v1711_v13 = vpop.f32.mrb[58].mxu0 }
 0x2e5   : > { %v1266_v30 = vadd.f32 %v1711_v13, %v1475_v37  ;;  %v1260_v18 = vpop.f32.mrb[59].mxu0 }
 0x2e6   : > { %v1261_v29 = vadd.f32 %v1475_v37, %v1260_v18 }
 0x2e7   : > { %1332 = vst [vmem:[%s2475_s23 + $0x18] sm:$0xff] %v1266_v30 }
 0x2e8   : > { %1331 = vst [vmem:[%s2475_s23 + $0x10] sm:$0xff] %v1261_v29 }
 0x2ec   : > { %v1714_v31 = vpop.f32.mrb[60].mxu0 }
 0x2ed   : > { %v1276_v32 = vadd.f32 %v1714_v31, %v1475_v37  ;;  %v1270_v33 = vpop.f32.mrb[61].mxu0 }
 0x2ee   : > { %v1271_v28 = vadd.f32 %v1475_v37, %v1270_v33 }
 0x2ef   : > { %1334 = vst [vmem:[%s2475_s23 + $0x28] sm:$0xff] %v1276_v32 }
 0x2f0   : > { %1333 = vst [vmem:[%s2475_s23 + $0x20] sm:$0xff] %v1271_v28 }
 0x2f4   : > { %v1717_v19 = vpop.f32.mrb[62].mxu0 }
 0x2f5   : > { %v1286_v58 = vadd.f32 %v1717_v19, %v1475_v37  ;;  %v1280_v35 = vpop.f32.mrb[63].mxu0 }
 0x2f6   : > { %v1281_v39 = vadd.f32 %v1475_v37, %v1280_v35 }
 0x2f7   : > { %1336 = vst [vmem:[%s2475_s23 + $0x38] sm:$0xff] %v1286_v58 }
 0x2f8   : > { %1335 = vst [vmem:[%s2475_s23 + $0x30] sm:$0xff] %v1281_v39 }
 0x2fc   : > { %v1720_v40 = vpop.f32.mrb[64].mxu0 }
 0x2fd   : > { %v1296_v41 = vadd.f32 %v1720_v40, %v1475_v37  ;;  %v1290_v42 = vpop.f32.mrb[65].mxu0 }
 0x2fe   : > { %v1291_v43 = vadd.f32 %v1475_v37, %v1290_v42 }
 0x2ff   : > { %1338 = vst [vmem:[%s2475_s23 + $0x48] sm:$0xff] %v1296_v41 }
 0x300   : > { %1337 = vst [vmem:[%s2475_s23 + $0x40] sm:$0xff] %v1291_v43 }
 0x304   : > { %v1723_v44 = vpop.f32.mrb[66].mxu0 }
 0x305   : > { %v1306_v45 = vadd.f32 %v1723_v44, %v1475_v37  ;;  %v1300_v46 = vpop.f32.mrb[67].mxu0 }
 0x306   : > { %v1301_v47 = vadd.f32 %v1475_v37, %v1300_v46 }
 0x307   : > { %1340 = vst [vmem:[%s2475_s23 + $0x58] sm:$0xff] %v1306_v45 }
 0x308   : > { %1339 = vst [vmem:[%s2475_s23 + $0x50] sm:$0xff] %v1301_v47 }
 0x30c   : > { %v1726_v49 = vpop.f32.mrb[68].mxu0 }
 0x30d   : > { %v1316_v50 = vadd.f32 %v1726_v49, %v1475_v37  ;;  %v1310_v52 = vpop.f32.mrb[69].mxu0 }
 0x30e   : > { %v1311_v53 = vadd.f32 %v1475_v37, %v1310_v52 }
 0x30f   : > { %1342 = vst [vmem:[%s2475_s23 + $0x68] sm:$0xff] %v1316_v50 }
 0x310   : > { %1341 = vst [vmem:[%s2475_s23 + $0x60] sm:$0xff] %v1311_v53 }
 0x314   : > { %v1729_v54 = vpop.f32.mrb[70].mxu0 }
 0x315   : > { %v1326_v55 = vadd.f32 %v1729_v54, %v1475_v37  ;;  %v1320_v56 = vpop.f32.mrb[71].mxu0 }
 0x316   : > { %v1321_v21 = vadd.f32 %v1475_v37, %v1320_v56 }
 0x317   : > { %1344 = vst [vmem:[%s2475_s23 + $0x78] sm:$0xff] %v1326_v55 }
 0x318   : > { %1343 = vst [vmem:[%s2475_s23 + $0x70] sm:$0xff] %v1321_v21 }
 0x319   : > { %1942 = shalt.err (!%p1939_p7)
}
 0x31a   : > { %s1943_s20 = scalar_lea.hbm %s2496_s14, 2048  ;;  %s1947_s22 = scalar_lea.hbm %s2552_s7, 4096 }
 0x31b   : > { %p1944_p8 = scmp.ne.s32.totalorder %s2496_s14, %s1943_s20  ;;  %p1948_p1 = scmp.lt.u32.totalorder %s2496_s14, %s2552_s7 }
 0x31c   : > { %p1949_p0 = scmp.lt.u32.totalorder %s1947_s22, %s1943_s20  ;;  %p1951_p6 = scmp.lt.u32.totalorder %s1943_s20, %s2496_s14 }
 0x31d   : > { %p1945_p11 = pnand %p1944_p8, %p2563_p9 }
 0x31e   : > { %p1950_p5 = por %p1949_p0, %p1948_p1 }
 0x31f   : > { %p1946_p13 = pneg %p1945_p11 }
 0x320   : > { %p1952_p10 = por %p1951_p6, %p1950_p5 }
 0x322   : > { %p1953_p12 = pnand %p1952_p10, %p1946_p13 }
 0x324   : > { %1956 = shalt.err (!%p1953_p12)
}
 0x325   : > { %s2002_s9 = smov 128   ;;  %s2003_s18 = smov 8  }
 0x326   : > { %1850 = dma.vmem_to_hbm [thread:$0]  (%p2563_p9), %s2498_s8, 2048, %s2496_s14, %s2504_s17, %s2002_s9, %s2002_s9, %s2003_s18  }
 0x327 PF: > { %p1862_p2 = scmp.ge.s32.totalorder %s1995_s27, 2  ;;  %s1374_s28 = sand.u32 1, %s1983_s24  }
 0x328   : > { %p2564_p3 = scmp.ne.s32.totalorder %s2557_s12, 0  ;;  %s1375_s16 = scalar_lea.sflag [#allocation4], %s1374_s28 }
 0x32a   : > { %p1857_p4 = pnand %p1862_p2, %p2564_p3 }
 0x32c   : > { %1978 = dma.done.wait (!%p1857_p4), %s1375_s16, 2048  }
 0x32d   : > { %1980 = vsyncadd (!%p1857_p4), %s1375_s16, 4294965248  ;;  %p18_p7 = scmp.ge.s32.totalorder %s2069_s30, 4   ;;  %s2565_s24 = smov %s1987_s25 }
 0x32e   : > { %s2566_s25 = smov %s1991_s26  ;;  %s2567_s26 = smov %s2080_s10 }
 0x32f   : > { %s2568_s27 = smov %s2069_s30  ;;  %20 = sbr.rel (!%p18_p7) target bundleno = 4 (0x4), region = 88 }
 0x336   :  { %1380 = vsyncpa [#allocation3], 1 }
 0x337   :  { %1382 = vsyncpa [#allocation3 + $0x1], 1 }
 0x338   :  { %1383 = vsyncpa [#allocation4], 1 }
 0x339   :  { %1385 = vsyncpa [#allocation4 + $0x1], 1 }

</bundles_post_ra>
